<compile_context>
chip_gen: v7x
topology: tpu7x:2x2x1
jax: 0.10.0
libtpu: 0.0.40
codegen_flags: <defaults>
</compile_context>

<pallas_src>
import math
import functools

import jax
import jax.numpy as jnp
from jax import lax
from jax.experimental import pallas as pl
from jax.experimental.pallas import tpu as pltpu


def _gelu_exact(x):
    # PyTorch activation='gelu' -> exact erf gelu (f32).
    return 0.5 * x * (1.0 + lax.erf(x * (1.0 / math.sqrt(2.0))))


def encoder_stack_kernel(
    x_ref,                       # (B*S, Ep) f32 input block (B sequences)
    wqkv_ref, bqkv_ref,          # (L, Ep, 3*D*H) bf16, (L, 1, 3*D*H) f32
    wo_ref, bo_ref,              # (L, D*H, Ep) bf16, (L, 1, Ep) f32
    ln1w_ref, ln1b_ref,          # (L, 1, Ep) f32
    ln2w_ref, ln2b_ref,          # (L, 1, Ep) f32
    w1_ref, b1_ref,              # (L, Ep, F) bf16, (L, 1, F) f32
    w2_ref, b2_ref,              # (L, F, Ep) bf16, (L, 1, Ep) f32
    fnw_ref, fnb_ref,            # (1, 1, Ep) f32 final encoder LayerNorm
    out_ref,                     # (B*S, Ep) f32 — resident across layers
    *, E, Ep, D, H, S, B,
):
    l = pl.program_id(1)
    scale = 1.0 / math.sqrt(D)

    # Valid-lane mask for LayerNorm over the zero-padded model dim (E -> Ep).
    lane = lax.broadcasted_iota(jnp.int32, (1, Ep), 1)
    emask = (lane < E).astype(jnp.float32)

    def layer_norm(z, w, b, eps=1e-5):
        inv_n = 1.0 / E
        mu = jnp.sum(z, axis=-1, keepdims=True) * inv_n
        zc = (z - mu) * emask                         # centered, pads masked off
        var = jnp.sum(zc * zc, axis=-1, keepdims=True) * inv_n
        return zc * lax.rsqrt(var + eps) * w + b      # pads stay exactly zero

    # First layer for this batch tile: load input into the resident block.
    @pl.when(l == 0)
    def _():
        out_ref[...] = x_ref[...]

    x = out_ref[...]                                  # (B*S, Ep) f32
    xb = x.astype(jnp.bfloat16)

    # ---- fused QKV projection: one wide MXU matmul -----------------------
    qkv = jnp.dot(xb, wqkv_ref[l],
                  preferred_element_type=jnp.float32) + bqkv_ref[l]   # (B*S, 3*D*H)

    # Relayout to the attention layout: (S, B*H) with lane index = b*H + h.
    def att_layout(kind, d):
        off = (kind * D + d) * H
        return jnp.concatenate(
            [qkv[b * S:(b + 1) * S, off:off + H] for b in range(B)], axis=-1)

    q = [att_layout(0, d) * scale for d in range(D)]
    k = [att_layout(1, d) for d in range(D)]
    v = [att_layout(2, d) for d in range(D)]

    # scores s[j, i, b*H+h]; softmax over j (leading/unrolled axis -> VALU only)
    s = k[0][:, None, :] * q[0][None, :, :]           # (S, S, B*H)
    for d in range(1, D):
        s = s + k[d][:, None, :] * q[d][None, :, :]
    s = s - jnp.max(s, axis=0, keepdims=True)
    p = jnp.exp(s)
    p = p * pl.reciprocal(jnp.sum(p, axis=0, keepdims=True), approx=True)

    # Per-dim attention output, then back to token-major rows (B*S, D*H).
    o = [jnp.sum(p * v[d][:, None, :], axis=0) for d in range(D)]     # (S, B*H)
    att_tok = jnp.concatenate(
        [jnp.concatenate([o[d][:, b * H:(b + 1) * H] for d in range(D)], axis=-1)
         for b in range(B)], axis=0)                  # (B*S, D*H)

    attn = jnp.dot(att_tok.astype(jnp.bfloat16), wo_ref[l],
                   preferred_element_type=jnp.float32) + bo_ref[l]
    x = layer_norm(x + attn, ln1w_ref[l], ln1b_ref[l])

    # ---- feed-forward ----------------------------------------------------
    h1 = jnp.dot(x.astype(jnp.bfloat16), w1_ref[l],
                 preferred_element_type=jnp.float32) + b1_ref[l]
    h1 = _gelu_exact(h1)
    h2 = jnp.dot(h1.astype(jnp.bfloat16), w2_ref[l],
                 preferred_element_type=jnp.float32) + b2_ref[l]
    y = layer_norm(x + h2, ln2w_ref[l], ln2b_ref[l])

    out_ref[...] = y

    # Last layer for this batch tile: apply the final encoder LayerNorm.
    @pl.when(l == pl.num_programs(1) - 1)
    def _():
        out_ref[...] = layer_norm(y, fnw_ref[0], fnb_ref[0])


def run_encoder_stack(x_pad, kparams, *, N, B, S, E, Ep, H, D, L, F):
    assert N % B == 0
    NT = N // B
    C = 3 * D * H
    DH = D * H
    kernel = functools.partial(encoder_stack_kernel,
                               E=E, Ep=Ep, D=D, H=H, S=S, B=B)

    # Resident blocks: full array, constant index map -> DMA'd exactly once.
    def resident(shape):
        return pl.BlockSpec(shape, lambda n, l, _s=len(shape): (0,) * _s)

    in_specs = [
        pl.BlockSpec((B * S, Ep), lambda n, l: (n, 0)),   # x (per batch tile)
        resident((L, Ep, C)),        # wqkv
        resident((L, 1, C)),         # bqkv
        resident((L, DH, Ep)),       # wo
        resident((L, 1, Ep)),        # bo
        resident((L, 1, Ep)),        # ln1 w
        resident((L, 1, Ep)),        # ln1 b
        resident((L, 1, Ep)),        # ln2 w
        resident((L, 1, Ep)),        # ln2 b
        resident((L, Ep, F)),        # ffn W1
        resident((L, 1, F)),         # ffn b1
        resident((L, F, Ep)),        # ffn W2
        resident((L, 1, Ep)),        # ffn b2
        resident((1, 1, Ep)),        # final norm w
        resident((1, 1, Ep)),        # final norm b
    ]
    out_spec = pl.BlockSpec((B * S, Ep), lambda n, l: (n, 0))
    return pl.pallas_call(
        kernel,
        out_shape=jax.ShapeDtypeStruct((N * S, Ep), jnp.float32),
        grid_spec=pltpu.PrefetchScalarGridSpec(
            num_scalar_prefetch=0,
            grid=(NT, L),                 # batch tiles outer, layers innermost
            in_specs=in_specs,
            out_specs=out_spec),
        compiler_params=pltpu.CompilerParams(
            dimension_semantics=("parallel", "arbitrary")),
    )(x_pad, *kparams)


def prepare_params(in_proj_w, in_proj_b, out_proj_w, out_proj_b,
                   norm1_w, norm1_b, norm2_w, norm2_b,
                   lin1_w, lin1_b, lin2_w, lin2_b,
                   final_w, final_b, *, E, H, F, Ep):
    """PyTorch-layout params -> kernel layout: fused QKV weight (column index
    qkv*D*H + d*H + h), fused out-proj (row index d*H + h), model dim
    zero-padded E->Ep, matmul weights stored bf16."""
    D = E // H
    pe = Ep - E

    # q/k/v: x @ W.T ; PyTorch feature index for (type i, head h, dim d) is
    # i*E + h*D + d.  Re-pack columns so c = i*(D*H) + d*H + h.
    in_t = jnp.transpose(in_proj_w, (0, 2, 1))                # (L, E_in, 3E_out)
    w_cols, b_cols = [], []
    for i in range(3):                                        # q, k, v
        for d in range(D):                                    # within-head dim
            w_cols.append(in_t[:, :, i * E + d:(i + 1) * E:D])      # (L, E, H)
            b_cols.append(in_proj_b[:, i * E + d:(i + 1) * E:D])    # (L, H)
    wqkv = jnp.concatenate(w_cols, axis=-1)                   # (L, E, 3*D*H)
    wqkv = jnp.pad(wqkv, ((0, 0), (0, pe), (0, 0))).astype(jnp.bfloat16)
    bqkv = jnp.concatenate(b_cols, axis=-1)[:, None, :]       # (L, 1, 3*D*H)

    # out-proj: input feature h*D + d  -> kernel row d*H + h.
    out_t = jnp.transpose(out_proj_w, (0, 2, 1))              # (L, E_in, E_out)
    wo = jnp.concatenate([out_t[:, d::D, :] for d in range(D)], axis=1)  # (L, D*H, E)
    wo = jnp.pad(wo, ((0, 0), (0, 0), (0, pe))).astype(jnp.bfloat16)
    bo = jnp.pad(out_proj_b, ((0, 0), (0, pe)))[:, None, :]   # (L, 1, Ep)

    padv = lambda a: jnp.pad(a, ((0, 0), (0, pe)))[:, None, :]    # zeros in pads
    ln1w, ln1b = padv(norm1_w), padv(norm1_b)
    ln2w, ln2b = padv(norm2_w), padv(norm2_b)

    w1 = jnp.pad(jnp.transpose(lin1_w, (0, 2, 1)),
                 ((0, 0), (0, pe), (0, 0))).astype(jnp.bfloat16)  # (L, Ep, F)
    b1 = lin1_b[:, None, :]                                       # (L, 1, F)
    w2 = jnp.pad(jnp.transpose(lin2_w, (0, 2, 1)),
                 ((0, 0), (0, 0), (0, pe))).astype(jnp.bfloat16)  # (L, F, Ep)
    b2 = jnp.pad(lin2_b, ((0, 0), (0, pe)))[:, None, :]           # (L, 1, Ep)

    fnw = jnp.pad(final_w, (0, pe))[None, None, :]                # (1, 1, Ep)
    fnb = jnp.pad(final_b, (0, pe))[None, None, :]

    return (wqkv, bqkv, wo, bo, ln1w, ln1b, ln2w, ln2b,
            w1, b1, w2, b2, fnw, fnb)


def encoder_forward(x, pos, kparams, pos_table, *, E, Ep, H, D, L, F, B):
    # x: (S, N, E) seq-first (PyTorch convention); pos: (N*T,)
    S, N, _ = x.shape
    x_flat = jnp.transpose(x, (1, 0, 2)).reshape(N * S, E)    # token-major
    x_pad = jnp.pad(x_flat, ((0, 0), (0, Ep - E)))
    enc = run_encoder_stack(x_pad, kparams,
                            N=N, B=B, S=S, E=E, Ep=Ep, H=H, D=D, L=L, F=F)
    enc = enc[:, :E].reshape(N, S, E)
    u = enc[:, 0, :]                                          # encoder(x)[0] -> (N, E)
    num_target = pos.shape[0] // N
    v = jnp.take(pos_table, pos, axis=0)                      # (N*T, E) embedding glue
    v = v + jnp.repeat(u, num_target, axis=0)                 # u.repeat(1,T).reshape
    return v.reshape(N, num_target, E)


if __name__ == "__main__":
    # small shapes consistent with the module: nhead=32 -> hidden_dim % 32 == 0
    N, S, E, H, L, F = 8, 8, 64, 32, 2, 640     # batch, seq, d_model, heads, layers, ffn
    B = 4                                       # sequences per activation block
    NUM_POS, T = 16, 4                          # num_pos, num_target
    D = E // H                                  # head dim (2)
    Ep = -(-E // 128) * 128                     # lane-padded model dim (128)
    assert E % H == 0 and S % 8 == 0 and F % 128 == 0
    assert N % B == 0 and (N // B) >= 2         # keep >=2 parallel tiles (v7x 2 TCs)
    assert B * H == 128                         # full lane occupancy in attention

    key = jax.random.PRNGKey(0)
    ks = jax.random.split(key, 12)
    init = lambda k, shp, sc=0.05: jax.random.normal(k, shp, jnp.float32) * sc

    # deterministic synthetic parameters in PyTorch layout (weight = (out, in))
    in_proj_w = init(ks[0], (L, 3 * E, E))
    in_proj_b = init(ks[1], (L, 3 * E))
    out_proj_w = init(ks[2], (L, E, E))
    out_proj_b = init(ks[3], (L, E))
    norm1_w = jnp.ones((L, E), jnp.float32); norm1_b = jnp.zeros((L, E), jnp.float32)
    norm2_w = jnp.ones((L, E), jnp.float32); norm2_b = jnp.zeros((L, E), jnp.float32)
    lin1_w = init(ks[4], (L, F, E)); lin1_b = init(ks[5], (L, F))
    lin2_w = init(ks[6], (L, E, F)); lin2_b = init(ks[7], (L, E))
    final_w = jnp.ones((E,), jnp.float32); final_b = jnp.zeros((E,), jnp.float32)
    pos_table = init(ks[8], (NUM_POS, E))        # nn.Embedding(num_pos, hidden_dim)

    # example inputs in the PyTorch convention: x is seq-first (S, N, E)
    x = jax.random.normal(ks[9], (S, N, E), jnp.float32)
    pos = jax.random.randint(ks[10], (N * T,), 0, NUM_POS)

    kparams = prepare_params(
        in_proj_w, in_proj_b, out_proj_w, out_proj_b,
        norm1_w, norm1_b, norm2_w, norm2_b,
        lin1_w, lin1_b, lin2_w, lin2_b,
        final_w, final_b, E=E, H=H, F=F, Ep=Ep)

    out = encoder_forward(x, pos, kparams, pos_table,
                          E=E, Ep=Ep, H=H, D=D, L=L, F=F, B=B)
    out = jax.block_until_ready(out)
    assert out.shape == (N, T, E) and out.dtype == jnp.float32
    assert bool(jnp.all(jnp.isfinite(out)))
    print("KERNEL_OK")
</pallas_src>

<mosaic_0001>
module attributes {stable_mosaic.version = 11 : i64} {
  func.func @encoder_stack_kernel(%arg0: i32, %arg1: i32, %arg2: memref<32x128xf32, #tpu.memory_space<vmem>>, %arg3: memref<2x128x192xbf16, #tpu.memory_space<vmem>>, %arg4: memref<2x1x192xf32, #tpu.memory_space<vmem>>, %arg5: memref<2x64x128xbf16, #tpu.memory_space<vmem>>, %arg6: memref<2x1x128xf32, #tpu.memory_space<vmem>>, %arg7: memref<2x1x128xf32, #tpu.memory_space<vmem>>, %arg8: memref<2x1x128xf32, #tpu.memory_space<vmem>>, %arg9: memref<2x1x128xf32, #tpu.memory_space<vmem>>, %arg10: memref<2x1x128xf32, #tpu.memory_space<vmem>>, %arg11: memref<2x128x640xbf16, #tpu.memory_space<vmem>>, %arg12: memref<2x1x640xf32, #tpu.memory_space<vmem>>, %arg13: memref<2x640x128xbf16, #tpu.memory_space<vmem>>, %arg14: memref<2x1x128xf32, #tpu.memory_space<vmem>>, %arg15: memref<1x1x128xf32, #tpu.memory_space<vmem>>, %arg16: memref<1x1x128xf32, #tpu.memory_space<vmem>>, %arg17: memref<32x128xf32, #tpu.memory_space<vmem>>) attributes {dimension_semantics = [#tpu.dimension_semantics<parallel>, #tpu.dimension_semantics<arbitrary>], iteration_bounds = array<i64: 2, 2>, scalar_prefetch = 0 : i64, scratch_operands = 0 : i64, tpu.core_type = #tpu.core_type<tc>, window_params = [{transform_indices = @transform_0, window_bounds = array<i64: 32, 128>}, {pipeline_mode = #tpu.pipeline_mode<synchronous>, transform_indices = @transform_1, window_bounds = array<i64: 2, 128, 192>}, {pipeline_mode = #tpu.pipeline_mode<synchronous>, transform_indices = @transform_2, window_bounds = array<i64: 2, 1, 192>}, {pipeline_mode = #tpu.pipeline_mode<synchronous>, transform_indices = @transform_3, window_bounds = array<i64: 2, 64, 128>}, {pipeline_mode = #tpu.pipeline_mode<synchronous>, transform_indices = @transform_4, window_bounds = array<i64: 2, 1, 128>}, {pipeline_mode = #tpu.pipeline_mode<synchronous>, transform_indices = @transform_5, window_bounds = array<i64: 2, 1, 128>}, {pipeline_mode = #tpu.pipeline_mode<synchronous>, transform_indices = @transform_6, window_bounds = array<i64: 2, 1, 128>}, {pipeline_mode = #tpu.pipeline_mode<synchronous>, transform_indices = @transform_7, window_bounds = array<i64: 2, 1, 128>}, {pipeline_mode = #tpu.pipeline_mode<synchronous>, transform_indices = @transform_8, window_bounds = array<i64: 2, 1, 128>}, {pipeline_mode = #tpu.pipeline_mode<synchronous>, transform_indices = @transform_9, window_bounds = array<i64: 2, 128, 640>}, {pipeline_mode = #tpu.pipeline_mode<synchronous>, transform_indices = @transform_10, window_bounds = array<i64: 2, 1, 640>}, {pipeline_mode = #tpu.pipeline_mode<synchronous>, transform_indices = @transform_11, window_bounds = array<i64: 2, 640, 128>}, {pipeline_mode = #tpu.pipeline_mode<synchronous>, transform_indices = @transform_12, window_bounds = array<i64: 2, 1, 128>}, {pipeline_mode = #tpu.pipeline_mode<synchronous>, transform_indices = @transform_13, window_bounds = array<i64: 1, 1, 128>}, {pipeline_mode = #tpu.pipeline_mode<synchronous>, transform_indices = @transform_14, window_bounds = array<i64: 1, 1, 128>}, {transform_indices = @transform_15, window_bounds = array<i64: 32, 128>}]} {
    %0 = tpu.iota {dimensions = array<i32: 1>} : vector<1x128xi32>
    %c64_i32 = arith.constant 64 : i32
    %1 = vector.broadcast %c64_i32 : i32 to vector<1x128xi32>
    %2 = arith.cmpi slt, %0, %1 : vector<1x128xi32>
    %3 = arith.extui %2 : vector<1x128xi1> to vector<1x128xi32>
    %4 = arith.sitofp %3 : vector<1x128xi32> to vector<1x128xf32>
    %c0_i32 = arith.constant 0 : i32
    %5 = arith.cmpi eq, %arg1, %c0_i32 : i32
    %6 = arith.extui %5 : i1 to i32
    %c0_i32_0 = arith.constant 0 : i32
    %7 = arith.cmpi ne, %6, %c0_i32_0 : i32
    scf.if %7 {
      %c0_51 = arith.constant 0 : index
      %c0_52 = arith.constant 0 : index
      %195 = vector.load %arg2[%c0_51, %c0_52] : memref<32x128xf32, #tpu.memory_space<vmem>>, vector<32x128xf32>
      %c0_53 = arith.constant 0 : index
      %c0_54 = arith.constant 0 : index
      %196 = vector.load %arg17[%c0_53, %c0_54] : memref<32x128xf32, #tpu.memory_space<vmem>>, vector<32x128xf32>
      tpu.vector_store %arg17[%c0_53, %c0_54], %195 {strides = array<i32>} : memref<32x128xf32, #tpu.memory_space<vmem>>, vector<32x128xf32>,
    } else {
    }
    %c0 = arith.constant 0 : index
    %c0_1 = arith.constant 0 : index
    %8 = vector.load %arg17[%c0, %c0_1] : memref<32x128xf32, #tpu.memory_space<vmem>>, vector<32x128xf32>
    %9 = arith.truncf %8 : vector<32x128xf32> to vector<32x128xbf16>
    %10 = arith.index_cast %arg1 : i32 to index
    %c0_2 = arith.constant 0 : index
    %c0_3 = arith.constant 0 : index
    %11 = vector.load %arg3[%10, %c0_2, %c0_3] : memref<2x128x192xbf16, #tpu.memory_space<vmem>>, vector<1x128x192xbf16>
    %12 = vector.shape_cast %11 : vector<1x128x192xbf16> to vector<128x192xbf16>
    %cst = arith.constant dense<0.000000e+00> : vector<32x192xf32>
    %13 = tpu.matmul %9, %12, %cst {dimension_numbers = #tpu.dot_dimension_numbers<[1], [0], [0], [1], [0, 0, 1, 1], [], []>} : vector<32x128xbf16>, vector<128x192xbf16>, vector<32x192xf32> -> vector<32x192xf32>
    %14 = arith.index_cast %arg1 : i32 to index
    %c0_4 = arith.constant 0 : index
    %c0_5 = arith.constant 0 : index
    %15 = vector.load %arg4[%14, %c0_4, %c0_5] : memref<2x1x192xf32, #tpu.memory_space<vmem>>, vector<1x1x192xf32>
    %16 = vector.shape_cast %15 : vector<1x1x192xf32> to vector<1x192xf32>
    %17 = vector.broadcast %16 : vector<1x192xf32> to vector<32x192xf32>
    %18 = arith.addf %13, %17 : vector<32x192xf32>
    %19 = vector.extract_strided_slice %18 {offsets = [0, 0], sizes = [8, 32], strides = [1, 1]} : vector<32x192xf32> to vector<8x32xf32>
    %20 = vector.extract_strided_slice %18 {offsets = [8, 0], sizes = [8, 32], strides = [1, 1]} : vector<32x192xf32> to vector<8x32xf32>
    %21 = vector.extract_strided_slice %18 {offsets = [16, 0], sizes = [8, 32], strides = [1, 1]} : vector<32x192xf32> to vector<8x32xf32>
    %22 = vector.extract_strided_slice %18 {offsets = [24, 0], sizes = [8, 32], strides = [1, 1]} : vector<32x192xf32> to vector<8x32xf32>
    %23 = tpu.concatenate %19, %20, %21, %22 in 1 : vector<8x32xf32>, vector<8x32xf32>, vector<8x32xf32>, vector<8x32xf32> -> vector<8x128xf32>
    %cst_6 = arith.constant 0.707106769 : f32
    %24 = vector.broadcast %cst_6 : f32 to vector<8x128xf32>
    %25 = arith.mulf %23, %24 : vector<8x128xf32>
    %26 = vector.extract_strided_slice %18 {offsets = [0, 32], sizes = [8, 32], strides = [1, 1]} : vector<32x192xf32> to vector<8x32xf32>
    %27 = vector.extract_strided_slice %18 {offsets = [8, 32], sizes = [8, 32], strides = [1, 1]} : vector<32x192xf32> to vector<8x32xf32>
    %28 = vector.extract_strided_slice %18 {offsets = [16, 32], sizes = [8, 32], strides = [1, 1]} : vector<32x192xf32> to vector<8x32xf32>
    %29 = vector.extract_strided_slice %18 {offsets = [24, 32], sizes = [8, 32], strides = [1, 1]} : vector<32x192xf32> to vector<8x32xf32>
    %30 = tpu.concatenate %26, %27, %28, %29 in 1 : vector<8x32xf32>, vector<8x32xf32>, vector<8x32xf32>, vector<8x32xf32> -> vector<8x128xf32>
    %cst_7 = arith.constant 0.707106769 : f32
    %31 = vector.broadcast %cst_7 : f32 to vector<8x128xf32>
    %32 = arith.mulf %30, %31 : vector<8x128xf32>
    %33 = vector.extract_strided_slice %18 {offsets = [0, 64], sizes = [8, 32], strides = [1, 1]} : vector<32x192xf32> to vector<8x32xf32>
    %34 = vector.extract_strided_slice %18 {offsets = [8, 64], sizes = [8, 32], strides = [1, 1]} : vector<32x192xf32> to vector<8x32xf32>
    %35 = vector.extract_strided_slice %18 {offsets = [16, 64], sizes = [8, 32], strides = [1, 1]} : vector<32x192xf32> to vector<8x32xf32>
    %36 = vector.extract_strided_slice %18 {offsets = [24, 64], sizes = [8, 32], strides = [1, 1]} : vector<32x192xf32> to vector<8x32xf32>
    %37 = tpu.concatenate %33, %34, %35, %36 in 1 : vector<8x32xf32>, vector<8x32xf32>, vector<8x32xf32>, vector<8x32xf32> -> vector<8x128xf32>
    %38 = vector.extract_strided_slice %18 {offsets = [0, 96], sizes = [8, 32], strides = [1, 1]} : vector<32x192xf32> to vector<8x32xf32>
    %39 = vector.extract_strided_slice %18 {offsets = [8, 96], sizes = [8, 32], strides = [1, 1]} : vector<32x192xf32> to vector<8x32xf32>
    %40 = vector.extract_strided_slice %18 {offsets = [16, 96], sizes = [8, 32], strides = [1, 1]} : vector<32x192xf32> to vector<8x32xf32>
    %41 = vector.extract_strided_slice %18 {offsets = [24, 96], sizes = [8, 32], strides = [1, 1]} : vector<32x192xf32> to vector<8x32xf32>
    %42 = tpu.concatenate %38, %39, %40, %41 in 1 : vector<8x32xf32>, vector<8x32xf32>, vector<8x32xf32>, vector<8x32xf32> -> vector<8x128xf32>
    %43 = vector.extract_strided_slice %18 {offsets = [0, 128], sizes = [8, 32], strides = [1, 1]} : vector<32x192xf32> to vector<8x32xf32>
    %44 = vector.extract_strided_slice %18 {offsets = [8, 128], sizes = [8, 32], strides = [1, 1]} : vector<32x192xf32> to vector<8x32xf32>
    %45 = vector.extract_strided_slice %18 {offsets = [16, 128], sizes = [8, 32], strides = [1, 1]} : vector<32x192xf32> to vector<8x32xf32>
    %46 = vector.extract_strided_slice %18 {offsets = [24, 128], sizes = [8, 32], strides = [1, 1]} : vector<32x192xf32> to vector<8x32xf32>
    %47 = tpu.concatenate %43, %44, %45, %46 in 1 : vector<8x32xf32>, vector<8x32xf32>, vector<8x32xf32>, vector<8x32xf32> -> vector<8x128xf32>
    %48 = vector.extract_strided_slice %18 {offsets = [0, 160], sizes = [8, 32], strides = [1, 1]} : vector<32x192xf32> to vector<8x32xf32>
    %49 = vector.extract_strided_slice %18 {offsets = [8, 160], sizes = [8, 32], strides = [1, 1]} : vector<32x192xf32> to vector<8x32xf32>
    %50 = vector.extract_strided_slice %18 {offsets = [16, 160], sizes = [8, 32], strides = [1, 1]} : vector<32x192xf32> to vector<8x32xf32>
    %51 = vector.extract_strided_slice %18 {offsets = [24, 160], sizes = [8, 32], strides = [1, 1]} : vector<32x192xf32> to vector<8x32xf32>
    %52 = tpu.concatenate %48, %49, %50, %51 in 1 : vector<8x32xf32>, vector<8x32xf32>, vector<8x32xf32>, vector<8x32xf32> -> vector<8x128xf32>
    %53 = vector.shape_cast %37 : vector<8x128xf32> to vector<8x1x128xf32>
    %54 = vector.shape_cast %25 : vector<8x128xf32> to vector<1x8x128xf32>
    %55 = vector.broadcast %53 : vector<8x1x128xf32> to vector<8x8x128xf32>
    %56 = vector.broadcast %54 : vector<1x8x128xf32> to vector<8x8x128xf32>
    %57 = arith.mulf %55, %56 : vector<8x8x128xf32>
    %58 = vector.shape_cast %42 : vector<8x128xf32> to vector<8x1x128xf32>
    %59 = vector.shape_cast %32 : vector<8x128xf32> to vector<1x8x128xf32>
    %60 = vector.broadcast %58 : vector<8x1x128xf32> to vector<8x8x128xf32>
    %61 = vector.broadcast %59 : vector<1x8x128xf32> to vector<8x8x128xf32>
    %62 = arith.mulf %60, %61 : vector<8x8x128xf32>
    %63 = arith.addf %57, %62 : vector<8x8x128xf32>
    %cst_8 = arith.constant dense<0xFF800000> : vector<8x128xf32>
    %64 = vector.multi_reduction <maximumf>, %63, %cst_8 [0] : vector<8x8x128xf32> to vector<8x128xf32>
    %65 = vector.shape_cast %64 : vector<8x128xf32> to vector<1x8x128xf32>
    %66 = vector.broadcast %65 : vector<1x8x128xf32> to vector<8x8x128xf32>
    %67 = arith.subf %63, %66 : vector<8x8x128xf32>
    %68 = math.exp %67 : vector<8x8x128xf32>
    %cst_9 = arith.constant dense<0.000000e+00> : vector<8x128xf32>
    %69 = vector.multi_reduction <add>, %68, %cst_9 [0] : vector<8x8x128xf32> to vector<8x128xf32>
    %70 = vector.shape_cast %69 : vector<8x128xf32> to vector<1x8x128xf32>
    %71 = tpu.reciprocal %70 {approx = true} : vector<1x8x128xf32> -> vector<1x8x128xf32>
    %72 = vector.broadcast %71 : vector<1x8x128xf32> to vector<8x8x128xf32>
    %73 = arith.mulf %68, %72 : vector<8x8x128xf32>
    %74 = vector.shape_cast %47 : vector<8x128xf32> to vector<8x1x128xf32>
    %75 = vector.broadcast %74 : vector<8x1x128xf32> to vector<8x8x128xf32>
    %76 = arith.mulf %73, %75 : vector<8x8x128xf32>
    %cst_10 = arith.constant dense<0.000000e+00> : vector<8x128xf32>
    %77 = vector.multi_reduction <add>, %76, %cst_10 [0] : vector<8x8x128xf32> to vector<8x128xf32>
    %78 = vector.shape_cast %52 : vector<8x128xf32> to vector<8x1x128xf32>
    %79 = vector.broadcast %78 : vector<8x1x128xf32> to vector<8x8x128xf32>
    %80 = arith.mulf %73, %79 : vector<8x8x128xf32>
    %cst_11 = arith.constant dense<0.000000e+00> : vector<8x128xf32>
    %81 = vector.multi_reduction <add>, %80, %cst_11 [0] : vector<8x8x128xf32> to vector<8x128xf32>
    %82 = vector.extract_strided_slice %77 {offsets = [0, 0], sizes = [8, 32], strides = [1, 1]} : vector<8x128xf32> to vector<8x32xf32>
    %83 = vector.extract_strided_slice %81 {offsets = [0, 0], sizes = [8, 32], strides = [1, 1]} : vector<8x128xf32> to vector<8x32xf32>
    %84 = tpu.concatenate %82, %83 in 1 : vector<8x32xf32>, vector<8x32xf32> -> vector<8x64xf32>
    %85 = vector.extract_strided_slice %77 {offsets = [0, 32], sizes = [8, 32], strides = [1, 1]} : vector<8x128xf32> to vector<8x32xf32>
    %86 = vector.extract_strided_slice %81 {offsets = [0, 32], sizes = [8, 32], strides = [1, 1]} : vector<8x128xf32> to vector<8x32xf32>
    %87 = tpu.concatenate %85, %86 in 1 : vector<8x32xf32>, vector<8x32xf32> -> vector<8x64xf32>
    %88 = vector.extract_strided_slice %77 {offsets = [0, 64], sizes = [8, 32], strides = [1, 1]} : vector<8x128xf32> to vector<8x32xf32>
    %89 = vector.extract_strided_slice %81 {offsets = [0, 64], sizes = [8, 32], strides = [1, 1]} : vector<8x128xf32> to vector<8x32xf32>
    %90 = tpu.concatenate %88, %89 in 1 : vector<8x32xf32>, vector<8x32xf32> -> vector<8x64xf32>
    %91 = vector.extract_strided_slice %77 {offsets = [0, 96], sizes = [8, 32], strides = [1, 1]} : vector<8x128xf32> to vector<8x32xf32>
    %92 = vector.extract_strided_slice %81 {offsets = [0, 96], sizes = [8, 32], strides = [1, 1]} : vector<8x128xf32> to vector<8x32xf32>
    %93 = tpu.concatenate %91, %92 in 1 : vector<8x32xf32>, vector<8x32xf32> -> vector<8x64xf32>
    %94 = tpu.concatenate %84, %87, %90, %93 in 0 : vector<8x64xf32>, vector<8x64xf32>, vector<8x64xf32>, vector<8x64xf32> -> vector<32x64xf32>
    %95 = arith.truncf %94 : vector<32x64xf32> to vector<32x64xbf16>
    %96 = arith.index_cast %arg1 : i32 to index
    %c0_12 = arith.constant 0 : index
    %c0_13 = arith.constant 0 : index
    %97 = vector.load %arg5[%96, %c0_12, %c0_13] : memref<2x64x128xbf16, #tpu.memory_space<vmem>>, vector<1x64x128xbf16>
    %98 = vector.shape_cast %97 : vector<1x64x128xbf16> to vector<64x128xbf16>
    %cst_14 = arith.constant dense<0.000000e+00> : vector<32x128xf32>
    %99 = tpu.matmul %95, %98, %cst_14 {dimension_numbers = #tpu.dot_dimension_numbers<[1], [0], [0], [1], [0, 0, 1, 1], [], []>} : vector<32x64xbf16>, vector<64x128xbf16>, vector<32x128xf32> -> vector<32x128xf32>
    %100 = arith.index_cast %arg1 : i32 to index
    %c0_15 = arith.constant 0 : index
    %c0_16 = arith.constant 0 : index
    %101 = vector.load %arg6[%100, %c0_15, %c0_16] : memref<2x1x128xf32, #tpu.memory_space<vmem>>, vector<1x1x128xf32>
    %102 = vector.shape_cast %101 : vector<1x1x128xf32> to vector<1x128xf32>
    %103 = vector.broadcast %102 : vector<1x128xf32> to vector<32x128xf32>
    %104 = arith.addf %99, %103 : vector<32x128xf32>
    %105 = arith.addf %8, %104 : vector<32x128xf32>
    %106 = arith.index_cast %arg1 : i32 to index
    %c0_17 = arith.constant 0 : index
    %c0_18 = arith.constant 0 : index
    %107 = vector.load %arg7[%106, %c0_17, %c0_18] : memref<2x1x128xf32, #tpu.memory_space<vmem>>, vector<1x1x128xf32>
    %108 = vector.shape_cast %107 : vector<1x1x128xf32> to vector<1x128xf32>
    %109 = arith.index_cast %arg1 : i32 to index
    %c0_19 = arith.constant 0 : index
    %c0_20 = arith.constant 0 : index
    %110 = vector.load %arg8[%109, %c0_19, %c0_20] : memref<2x1x128xf32, #tpu.memory_space<vmem>>, vector<1x1x128xf32>
    %111 = vector.shape_cast %110 : vector<1x1x128xf32> to vector<1x128xf32>
    %cst_21 = arith.constant dense<0.000000e+00> : vector<32xf32>
    %112 = vector.multi_reduction <add>, %105, %cst_21 [1] : vector<32x128xf32> to vector<32xf32>
    %113 = vector.shape_cast %112 : vector<32xf32> to vector<32x1xf32>
    %cst_22 = arith.constant 1.562500e-02 : f32
    %114 = vector.broadcast %cst_22 : f32 to vector<32x1xf32>
    %115 = arith.mulf %113, %114 : vector<32x1xf32>
    %116 = vector.broadcast %115 : vector<32x1xf32> to vector<32x128xf32>
    %117 = arith.subf %105, %116 : vector<32x128xf32>
    %118 = vector.broadcast %4 : vector<1x128xf32> to vector<32x128xf32>
    %119 = arith.mulf %117, %118 : vector<32x128xf32>
    %120 = arith.mulf %119, %119 : vector<32x128xf32>
    %cst_23 = arith.constant dense<0.000000e+00> : vector<32xf32>
    %121 = vector.multi_reduction <add>, %120, %cst_23 [1] : vector<32x128xf32> to vector<32xf32>
    %122 = vector.shape_cast %121 : vector<32xf32> to vector<32x1xf32>
    %cst_24 = arith.constant 1.562500e-02 : f32
    %123 = vector.broadcast %cst_24 : f32 to vector<32x1xf32>
    %124 = arith.mulf %122, %123 : vector<32x1xf32>
    %cst_25 = arith.constant 9.99999974E-6 : f32
    %125 = vector.broadcast %cst_25 : f32 to vector<32x1xf32>
    %126 = arith.addf %124, %125 : vector<32x1xf32>
    %127 = math.rsqrt %126 : vector<32x1xf32>
    %128 = vector.broadcast %127 : vector<32x1xf32> to vector<32x128xf32>
    %129 = arith.mulf %119, %128 : vector<32x128xf32>
    %130 = vector.broadcast %108 : vector<1x128xf32> to vector<32x128xf32>
    %131 = arith.mulf %129, %130 : vector<32x128xf32>
    %132 = vector.broadcast %111 : vector<1x128xf32> to vector<32x128xf32>
    %133 = arith.addf %131, %132 : vector<32x128xf32>
    %134 = arith.truncf %133 : vector<32x128xf32> to vector<32x128xbf16>
    %135 = arith.index_cast %arg1 : i32 to index
    %c0_26 = arith.constant 0 : index
    %c0_27 = arith.constant 0 : index
    %136 = vector.load %arg11[%135, %c0_26, %c0_27] : memref<2x128x640xbf16, #tpu.memory_space<vmem>>, vector<1x128x640xbf16>
    %137 = vector.shape_cast %136 : vector<1x128x640xbf16> to vector<128x640xbf16>
    %cst_28 = arith.constant dense<0.000000e+00> : vector<32x640xf32>
    %138 = tpu.matmul %134, %137, %cst_28 {dimension_numbers = #tpu.dot_dimension_numbers<[1], [0], [0], [1], [0, 0, 1, 1], [], []>} : vector<32x128xbf16>, vector<128x640xbf16>, vector<32x640xf32> -> vector<32x640xf32>
    %139 = arith.index_cast %arg1 : i32 to index
    %c0_29 = arith.constant 0 : index
    %c0_30 = arith.constant 0 : index
    %140 = vector.load %arg12[%139, %c0_29, %c0_30] : memref<2x1x640xf32, #tpu.memory_space<vmem>>, vector<1x1x640xf32>
    %141 = vector.shape_cast %140 : vector<1x1x640xf32> to vector<1x640xf32>
    %142 = vector.broadcast %141 : vector<1x640xf32> to vector<32x640xf32>
    %143 = arith.addf %138, %142 : vector<32x640xf32>
    %cst_31 = arith.constant 5.000000e-01 : f32
    %144 = vector.broadcast %cst_31 : f32 to vector<32x640xf32>
    %145 = arith.mulf %144, %143 : vector<32x640xf32>
    %cst_32 = arith.constant 0.707106769 : f32
    %146 = vector.broadcast %cst_32 : f32 to vector<32x640xf32>
    %147 = arith.mulf %143, %146 : vector<32x640xf32>
    %148 = math.erf %147 : vector<32x640xf32>
    %cst_33 = arith.constant 1.000000e+00 : f32
    %149 = vector.broadcast %cst_33 : f32 to vector<32x640xf32>
    %150 = arith.addf %149, %148 : vector<32x640xf32>
    %151 = arith.mulf %145, %150 : vector<32x640xf32>
    %152 = arith.truncf %151 : vector<32x640xf32> to vector<32x640xbf16>
    %153 = arith.index_cast %arg1 : i32 to index
    %c0_34 = arith.constant 0 : index
    %c0_35 = arith.constant 0 : index
    %154 = vector.load %arg13[%153, %c0_34, %c0_35] : memref<2x640x128xbf16, #tpu.memory_space<vmem>>, vector<1x640x128xbf16>
    %155 = vector.shape_cast %154 : vector<1x640x128xbf16> to vector<640x128xbf16>
    %cst_36 = arith.constant dense<0.000000e+00> : vector<32x128xf32>
    %156 = tpu.matmul %152, %155, %cst_36 {dimension_numbers = #tpu.dot_dimension_numbers<[1], [0], [0], [1], [0, 0, 1, 1], [], []>} : vector<32x640xbf16>, vector<640x128xbf16>, vector<32x128xf32> -> vector<32x128xf32>
    %157 = arith.index_cast %arg1 : i32 to index
    %c0_37 = arith.constant 0 : index
    %c0_38 = arith.constant 0 : index
    %158 = vector.load %arg14[%157, %c0_37, %c0_38] : memref<2x1x128xf32, #tpu.memory_space<vmem>>, vector<1x1x128xf32>
    %159 = vector.shape_cast %158 : vector<1x1x128xf32> to vector<1x128xf32>
    %160 = vector.broadcast %159 : vector<1x128xf32> to vector<32x128xf32>
    %161 = arith.addf %156, %160 : vector<32x128xf32>
    %162 = arith.addf %133, %161 : vector<32x128xf32>
    %163 = arith.index_cast %arg1 : i32 to index
    %c0_39 = arith.constant 0 : index
    %c0_40 = arith.constant 0 : index
    %164 = vector.load %arg9[%163, %c0_39, %c0_40] : memref<2x1x128xf32, #tpu.memory_space<vmem>>, vector<1x1x128xf32>
    %165 = vector.shape_cast %164 : vector<1x1x128xf32> to vector<1x128xf32>
    %166 = arith.index_cast %arg1 : i32 to index
    %c0_41 = arith.constant 0 : index
    %c0_42 = arith.constant 0 : index
    %167 = vector.load %arg10[%166, %c0_41, %c0_42] : memref<2x1x128xf32, #tpu.memory_space<vmem>>, vector<1x1x128xf32>
    %168 = vector.shape_cast %167 : vector<1x1x128xf32> to vector<1x128xf32>
    %cst_43 = arith.constant dense<0.000000e+00> : vector<32xf32>
    %169 = vector.multi_reduction <add>, %162, %cst_43 [1] : vector<32x128xf32> to vector<32xf32>
    %170 = vector.shape_cast %169 : vector<32xf32> to vector<32x1xf32>
    %cst_44 = arith.constant 1.562500e-02 : f32
    %171 = vector.broadcast %cst_44 : f32 to vector<32x1xf32>
    %172 = arith.mulf %170, %171 : vector<32x1xf32>
    %173 = vector.broadcast %172 : vector<32x1xf32> to vector<32x128xf32>
    %174 = arith.subf %162, %173 : vector<32x128xf32>
    %175 = vector.broadcast %4 : vector<1x128xf32> to vector<32x128xf32>
    %176 = arith.mulf %174, %175 : vector<32x128xf32>
    %177 = arith.mulf %176, %176 : vector<32x128xf32>
    %cst_45 = arith.constant dense<0.000000e+00> : vector<32xf32>
    %178 = vector.multi_reduction <add>, %177, %cst_45 [1] : vector<32x128xf32> to vector<32xf32>
    %179 = vector.shape_cast %178 : vector<32xf32> to vector<32x1xf32>
    %cst_46 = arith.constant 1.562500e-02 : f32
    %180 = vector.broadcast %cst_46 : f32 to vector<32x1xf32>
    %181 = arith.mulf %179, %180 : vector<32x1xf32>
    %cst_47 = arith.constant 9.99999974E-6 : f32
    %182 = vector.broadcast %cst_47 : f32 to vector<32x1xf32>
    %183 = arith.addf %181, %182 : vector<32x1xf32>
    %184 = math.rsqrt %183 : vector<32x1xf32>
    %185 = vector.broadcast %184 : vector<32x1xf32> to vector<32x128xf32>
    %186 = arith.mulf %176, %185 : vector<32x128xf32>
    %187 = vector.broadcast %165 : vector<1x128xf32> to vector<32x128xf32>
    %188 = arith.mulf %186, %187 : vector<32x128xf32>
    %189 = vector.broadcast %168 : vector<1x128xf32> to vector<32x128xf32>
    %190 = arith.addf %188, %189 : vector<32x128xf32>
    %c0_48 = arith.constant 0 : index
    %c0_49 = arith.constant 0 : index
    %191 = vector.load %arg17[%c0_48, %c0_49] : memref<32x128xf32, #tpu.memory_space<vmem>>, vector<32x128xf32>
    tpu.vector_store %arg17[%c0_48, %c0_49], %190 {strides = array<i32>} : memref<32x128xf32, #tpu.memory_space<vmem>>, vector<32x128xf32>,
    %c1_i32 = arith.constant 1 : i32
    %192 = arith.cmpi eq, %arg1, %c1_i32 : i32
    %193 = arith.extui %192 : i1 to i32
    %c0_i32_50 = arith.constant 0 : i32
    %194 = arith.cmpi ne, %193, %c0_i32_50 : i32
    scf.if %194 {
      %c0_51 = arith.constant 0 : index
      %c0_52 = arith.constant 0 : index
      %c0_53 = arith.constant 0 : index
      %195 = vector.load %arg15[%c0_51, %c0_52, %c0_53] : memref<1x1x128xf32, #tpu.memory_space<vmem>>, vector<1x1x128xf32>
      %196 = vector.shape_cast %195 : vector<1x1x128xf32> to vector<1x128xf32>
      %c0_54 = arith.constant 0 : index
      %c0_55 = arith.constant 0 : index
      %c0_56 = arith.constant 0 : index
      %197 = vector.load %arg16[%c0_54, %c0_55, %c0_56] : memref<1x1x128xf32, #tpu.memory_space<vmem>>, vector<1x1x128xf32>
      %198 = vector.shape_cast %197 : vector<1x1x128xf32> to vector<1x128xf32>
      %cst_57 = arith.constant dense<0.000000e+00> : vector<32xf32>
      %199 = vector.multi_reduction <add>, %190, %cst_57 [1] : vector<32x128xf32> to vector<32xf32>
      %200 = vector.shape_cast %199 : vector<32xf32> to vector<32x1xf32>
      %cst_58 = arith.constant 1.562500e-02 : f32
      %201 = vector.broadcast %cst_58 : f32 to vector<32x1xf32>
      %202 = arith.mulf %200, %201 : vector<32x1xf32>
      %203 = vector.broadcast %202 : vector<32x1xf32> to vector<32x128xf32>
      %204 = arith.subf %190, %203 : vector<32x128xf32>
      %205 = vector.broadcast %4 : vector<1x128xf32> to vector<32x128xf32>
      %206 = arith.mulf %204, %205 : vector<32x128xf32>
      %207 = arith.mulf %206, %206 : vector<32x128xf32>
      %cst_59 = arith.constant dense<0.000000e+00> : vector<32xf32>
      %208 = vector.multi_reduction <add>, %207, %cst_59 [1] : vector<32x128xf32> to vector<32xf32>
      %209 = vector.shape_cast %208 : vector<32xf32> to vector<32x1xf32>
      %cst_60 = arith.constant 1.562500e-02 : f32
      %210 = vector.broadcast %cst_60 : f32 to vector<32x1xf32>
      %211 = arith.mulf %209, %210 : vector<32x1xf32>
      %cst_61 = arith.constant 9.99999974E-6 : f32
      %212 = vector.broadcast %cst_61 : f32 to vector<32x1xf32>
      %213 = arith.addf %211, %212 : vector<32x1xf32>
      %214 = math.rsqrt %213 : vector<32x1xf32>
      %215 = vector.broadcast %214 : vector<32x1xf32> to vector<32x128xf32>
      %216 = arith.mulf %206, %215 : vector<32x128xf32>
      %217 = vector.broadcast %196 : vector<1x128xf32> to vector<32x128xf32>
      %218 = arith.mulf %216, %217 : vector<32x128xf32>
      %219 = vector.broadcast %198 : vector<1x128xf32> to vector<32x128xf32>
      %220 = arith.addf %218, %219 : vector<32x128xf32>
      %c0_62 = arith.constant 0 : index
      %c0_63 = arith.constant 0 : index
      %221 = vector.load %arg17[%c0_62, %c0_63] : memref<32x128xf32, #tpu.memory_space<vmem>>, vector<32x128xf32>
      tpu.vector_store %arg17[%c0_62, %c0_63], %220 {strides = array<i32>} : memref<32x128xf32, #tpu.memory_space<vmem>>, vector<32x128xf32>,
    } else {
    }
    return
  }
  func.func @transform_0(%arg0: i32, %arg1: i32) -> (i32, i32) {
    %c0_i32 = arith.constant 0 : i32
    %c0_i32_0 = arith.constant 0 : i32
    return %arg0, %c0_i32 : i32, i32
  }
  func.func @transform_1(%arg0: i32, %arg1: i32) -> (i32, i32, i32) {
    %c0_i32 = arith.constant 0 : i32
    %c0_i32_0 = arith.constant 0 : i32
    %c0_i32_1 = arith.constant 0 : i32
    %c0_i32_2 = arith.constant 0 : i32
    return %c0_i32, %c0_i32_0, %c0_i32_1 : i32, i32, i32
  }
  func.func @transform_2(%arg0: i32, %arg1: i32) -> (i32, i32, i32) {
    %c0_i32 = arith.constant 0 : i32
    %c0_i32_0 = arith.constant 0 : i32
    %c0_i32_1 = arith.constant 0 : i32
    %c0_i32_2 = arith.constant 0 : i32
    return %c0_i32, %c0_i32_0, %c0_i32_1 : i32, i32, i32
  }
  func.func @transform_3(%arg0: i32, %arg1: i32) -> (i32, i32, i32) {
    %c0_i32 = arith.constant 0 : i32
    %c0_i32_0 = arith.constant 0 : i32
    %c0_i32_1 = arith.constant 0 : i32
    %c0_i32_2 = arith.constant 0 : i32
    return %c0_i32, %c0_i32_0, %c0_i32_1 : i32, i32, i32
  }
  func.func @transform_4(%arg0: i32, %arg1: i32) -> (i32, i32, i32) {
    %c0_i32 = arith.constant 0 : i32
    %c0_i32_0 = arith.constant 0 : i32
    %c0_i32_1 = arith.constant 0 : i32
    %c0_i32_2 = arith.constant 0 : i32
    return %c0_i32, %c0_i32_0, %c0_i32_1 : i32, i32, i32
  }
  func.func @transform_5(%arg0: i32, %arg1: i32) -> (i32, i32, i32) {
    %c0_i32 = arith.constant 0 : i32
    %c0_i32_0 = arith.constant 0 : i32
    %c0_i32_1 = arith.constant 0 : i32
    %c0_i32_2 = arith.constant 0 : i32
    return %c0_i32, %c0_i32_0, %c0_i32_1 : i32, i32, i32
  }
  func.func @transform_6(%arg0: i32, %arg1: i32) -> (i32, i32, i32) {
    %c0_i32 = arith.constant 0 : i32
    %c0_i32_0 = arith.constant 0 : i32
    %c0_i32_1 = arith.constant 0 : i32
    %c0_i32_2 = arith.constant 0 : i32
    return %c0_i32, %c0_i32_0, %c0_i32_1 : i32, i32, i32
  }
  func.func @transform_7(%arg0: i32, %arg1: i32) -> (i32, i32, i32) {
    %c0_i32 = arith.constant 0 : i32
    %c0_i32_0 = arith.constant 0 : i32
    %c0_i32_1 = arith.constant 0 : i32
    %c0_i32_2 = arith.constant 0 : i32
    return %c0_i32, %c0_i32_0, %c0_i32_1 : i32, i32, i32
  }
  func.func @transform_8(%arg0: i32, %arg1: i32) -> (i32, i32, i32) {
    %c0_i32 = arith.constant 0 : i32
    %c0_i32_0 = arith.constant 0 : i32
    %c0_i32_1 = arith.constant 0 : i32
    %c0_i32_2 = arith.constant 0 : i32
    return %c0_i32, %c0_i32_0, %c0_i32_1 : i32, i32, i32
  }
  func.func @transform_9(%arg0: i32, %arg1: i32) -> (i32, i32, i32) {
    %c0_i32 = arith.constant 0 : i32
    %c0_i32_0 = arith.constant 0 : i32
    %c0_i32_1 = arith.constant 0 : i32
    %c0_i32_2 = arith.constant 0 : i32
    return %c0_i32, %c0_i32_0, %c0_i32_1 : i32, i32, i32
  }
  func.func @transform_10(%arg0: i32, %arg1: i32) -> (i32, i32, i32) {
    %c0_i32 = arith.constant 0 : i32
    %c0_i32_0 = arith.constant 0 : i32
    %c0_i32_1 = arith.constant 0 : i32
    %c0_i32_2 = arith.constant 0 : i32
    return %c0_i32, %c0_i32_0, %c0_i32_1 : i32, i32, i32
  }
  func.func @transform_11(%arg0: i32, %arg1: i32) -> (i32, i32, i32) {
    %c0_i32 = arith.constant 0 : i32
    %c0_i32_0 = arith.constant 0 : i32
    %c0_i32_1 = arith.constant 0 : i32
    %c0_i32_2 = arith.constant 0 : i32
    return %c0_i32, %c0_i32_0, %c0_i32_1 : i32, i32, i32
  }
  func.func @transform_12(%arg0: i32, %arg1: i32) -> (i32, i32, i32) {
    %c0_i32 = arith.constant 0 : i32
    %c0_i32_0 = arith.constant 0 : i32
    %c0_i32_1 = arith.constant 0 : i32
    %c0_i32_2 = arith.constant 0 : i32
    return %c0_i32, %c0_i32_0, %c0_i32_1 : i32, i32, i32
  }
  func.func @transform_13(%arg0: i32, %arg1: i32) -> (i32, i32, i32) {
    %c0_i32 = arith.constant 0 : i32
    %c0_i32_0 = arith.constant 0 : i32
    %c0_i32_1 = arith.constant 0 : i32
    %c0_i32_2 = arith.constant 0 : i32
    return %c0_i32, %c0_i32_0, %c0_i32_1 : i32, i32, i32
  }
  func.func @transform_14(%arg0: i32, %arg1: i32) -> (i32, i32, i32) {
    %c0_i32 = arith.constant 0 : i32
    %c0_i32_0 = arith.constant 0 : i32
    %c0_i32_1 = arith.constant 0 : i32
    %c0_i32_2 = arith.constant 0 : i32
    return %c0_i32, %c0_i32_0, %c0_i32_1 : i32, i32, i32
  }
  func.func @transform_15(%arg0: i32, %arg1: i32) -> (i32, i32) {
    %c0_i32 = arith.constant 0 : i32
    %c0_i32_0 = arith.constant 0 : i32
    return %arg0, %c0_i32 : i32, i32
  }
}

</mosaic_0001>

<bundles_post_ra>
// kernel: tpu_custom_call.1
= control target key start
LH: loop header
LB: loop body
LE: loop exit
PB: predicated region body
PF: predicated region fallthrough
CT: control target
= control target key end

     0   :  { %s4297_s0 = inlined_call_operand.vmem [shape: f32[64,128], index: 0, kind: input, shape index: {}]   ;;  %s4298_s1 = inlined_call_operand.vmem [shape: bf16[2,128,192], index: 1, kind: input, shape index: {}]   ;;  %s4299_s2 = inlined_call_operand.vmem [shape: f32[2,1,192], index: 2, kind: input, shape index: {}]   ;;  %s4300_s3 = inlined_call_operand.vmem [shape: bf16[2,64,128], index: 3, kind: input, shape index: {}]   ;;  %s4301_s4 = inlined_call_operand.vmem [shape: f32[2,1,128], index: 4, kind: input, shape index: {}]   ;;  %s4302_s5 = inlined_call_operand.vmem [shape: f32[2,1,128], index: 5, kind: input, shape index: {}]   ;;  %s4303_s6 = inlined_call_operand.vmem [shape: f32[2,1,128], index: 6, kind: input, shape index: {}]   ;;  %s4304_s7 = inlined_call_operand.vmem [shape: f32[2,1,128], index: 7, kind: input, shape index: {}]   ;;  %s4305_s8 = inlined_call_operand.vmem [shape: f32[2,1,128], index: 8, kind: input, shape index: {}]   ;;  %s4306_s9 = inlined_call_operand.hbm [shape: bf16[2,128,640], index: 9, kind: input, shape index: {}]   ;;  %s4307_s10 = inlined_call_operand.vmem [shape: f32[2,1,640], index: 10, kind: input, shape index: {}]   ;;  %s4308_s11 = inlined_call_operand.hbm [shape: bf16[2,640,128], index: 11, kind: input, shape index: {}]   ;;  %s4309_s12 = inlined_call_operand.vmem [shape: f32[2,1,128], index: 12, kind: input, shape index: {}]   ;;  %s4310_s13 = inlined_call_operand.vmem [shape: f32[1,1,128], index: 13, kind: input, shape index: {}]   ;;  %s4311_s14 = inlined_call_operand.vmem [shape: f32[1,1,128], index: 14, kind: input, shape index: {}]   ;;  %s4312_s15 = inlined_call_operand.hbm [shape: f32[64,128], index: 15, kind: output, shape index: {}]  }
   0x1   :  { %4328 = sst [smem:[#allocation21_spill]] %s4304_s7 }
   0x2   :  { %4329 = sst [smem:[#allocation22_spill]] %s4305_s8 }
   0x3   :  { %4330 = sst [smem:[#allocation23_spill]] %s4310_s13 }
   0x4   :  { %4331 = sst [smem:[#allocation24_spill]] %s4311_s14 }
   0x5   :  { %4332 = sst [smem:[#allocation25_spill]] %s4312_s15 }
   0x6   :  { %20 = vsyncpa [#allocation3], 0 }
   0x7   :  { %21 = vsyncpa [#allocation6], 0 }
   0x8   :  { %22 = vsyncpa [#allocation4], 0 }
   0x9   :  { %24 = vsyncpa [#allocation4 + $0x1], 0  ;;  %s3647_s18 = smov 0   ;;  %s3649_s19 = smov 0  }
   0xa   :  { %s3651_s20 = smov 0   ;;  %s3653_s21 = smov 0  }
   0xb   :  { %s3655_s22 = smov 0   ;;  %s3657_s23 = smov 0  }
   0xc   :  { %s3659_s24 = smov 0   ;;  %s3661_s25 = smov 0  }
   0xd LB: > { %4333 = sst [smem:[#allocation11_spill]] %s3522_s18  ;;  %s2791_s26 = sadd.s32 4294967295, %s3550_s25   ;;  %s3550_s25 = sphi %s3661_s25, %s30_s25   ;;  %s3546_s24 = sphi %s3659_s24, %s4367_s24   ;;  %s3542_s23 = sphi %s3657_s23, %s4366_s23   ;;  %s3538_s22 = sphi %s3655_s22, %s4365_s22   ;;  %s3534_s21 = sphi %s3653_s21, %s4364_s21   ;;  %s3530_s20 = sphi %s3651_s20, %s4363_s20   ;;  %s3526_s19 = sphi %s3649_s19, %s4369_s19   ;;  %s3522_s18 = sphi %s3647_s18, %s4368_s18  }
   0xe   : > { %4334 = sst [smem:[#allocation12_spill]] %s3530_s20  ;;  %s2792_s27 = sadd.s32 4294967294, %s3550_s25  }
   0xf   : > { %4335 = sst [smem:[#allocation13_spill]] %s3542_s23  ;;  %s39_s28 = sadd.s32 1, %s3542_s23 }
  0x10   : > { %4336 = sst [smem:[#allocation14_spill]] %s3546_s24  ;;  %s42_s29 = sadd.s32 1, %s3546_s24 }
  0x11   : > { %4337 = sst [smem:[#allocation15_spill]] %s3550_s25  ;;  %p40_p0 = scmp.ge.s32.totalorder %s39_s28, 2 }
  0x12   : > { %s369_s30 = sadd.s32 1, %s3530_s20  ;;  %p379_p1 = scmp.ne.s32.totalorder %s3530_s20, %s3526_s19 }
  0x13   : > { %p380_p2 = scmp.eq.s32.totalorder %s2791_s26, 3  ;;  %s4371_s28 = smov (%p40_p0, %s39_s28), 0 }
  0x14   : > { %4338 = sst [smem:[#allocation16_spill]] %s4371_s28  ;;  %s4373_s29 = smov (!%p40_p0, %s42_s29), %s3546_s24 }
  0x15   : > { %p3697_p3 = por %p380_p2, %p379_p1  ;;  %p385_p4 = scmp.ne.s32.totalorder %s3526_s19, %s3522_s18 }
  0x16   : > { %p44_p5 = scmp.ge.s32.totalorder %s4373_s29, 2  ;;  %p386_p6 = scmp.eq.s32.totalorder %s2792_s27, 3 }
  0x17   : > { %s4339_s16 = scalar_select %p3697_p3, 1, 0 }
  0x18   : > { %p2793_p7 = scmp.ge.s32.totalorder %s3550_s25, 1  ;;  %p393_p8 = scmp.lt.s32.totalorder %s3550_s25, 5 }
  0x19   : > { %4340 = sst [smem:[#allocation17_spill]] %s4339_s16  ;;  %s4375_s29 = smov (%p44_p5, %s4373_s29), 0 }
  0x1a   : > { %4341 = sst [smem:[#allocation18_spill]] %s4375_s29  ;;  %p3707_p9 = por %p386_p6, %p385_p4 }
  0x1b   : > { %p3711_p10 = pnand %p2793_p7, %p393_p8  ;;  %s366_s28 = ssub.s32 %s3546_s24, %s4375_s29 }
  0x1c   : > { %s4342_s17 = scalar_select %p3707_p9, 1, 0 }
  0x1d   : > { %s4344_s23 = scalar_select %p3711_p10, 1, 0 }
  0x1e   : > { %4343 = sst [smem:[#allocation19_spill]] %s4342_s17  ;;  %p367_p11 = scmp.eq.s32.totalorder %s366_s28, 0 }
  0x1f   : > { %p3077_p12 = pneg %p3711_p10  ;;  %p3719_p13 = scmp.eq.s32.totalorder %s2791_s26, 0 }
  0x20   : > { %s3724_s18 = scalar_select %p367_p11, %s3530_s20, %s369_s30  }
  0x21   : > { %s4345_s27 = scalar_select %p3719_p13, 1, 0 }
  0x22   : > { %4346 = sst [smem:[#allocation20_spill]] %s3724_s18  ;;  %s3552_s25 = smov [#allocation2]  }
  0x23   : > { %s429_s15 = sshll.u32 %s3552_s25, 4  ;;  %p3728_p0 = pnand %p3719_p13, %p3077_p12  ;;  %s430_s15 = int_to_ptr.vmem [resolvable:$true] %s429_s15 }
  0x24   : > { %s3392_s26 = scalar_lea.hbm %s4306_s9, 10240 }
  0x25   : > { %p3393_p1 = scmp.ne.s32.totalorder %s4306_s9, %s3392_s26  ;;  %p3394_p2 = pneg %p3728_p0 }
  0x26   : > { %p3399_p6 = scmp.lt.u32.totalorder %s3392_s26, %s4306_s9 }
  0x27   : > { %p3395_p4 = pnand %p3394_p2, %p3393_p1 }
  0x29   : > { %p3396_p5 = pneg %p3395_p4 }
  0x2b   : > { %p3401_p7 = pnand %p3399_p6, %p3396_p5 }
  0x2d   : > { %3404 = shalt.err (!%p3401_p7)
}
  0x2e   : > { %s3405_s18 = scalar_lea.vmem %s430_s15, 10240  ;;  %p3413_p9 = scmp.lt.s32.totalorder %s430_s15, %s430_s15 }
  0x2f   : > { %p3406_p8 = scmp.ne.s32.totalorder %s430_s15, %s3405_s18  ;;  %p3414_p3 = scmp.lt.s32.totalorder %s3405_s18, %s3405_s18 }
  0x31   : > { %p3408_p11 = pnand %p3406_p8, %p3394_p2  ;;  %p3415_p13 = por %p3414_p3, %p3413_p9 }
  0x33   : > { %p3409_p12 = pneg %p3408_p11 }
  0x35   : > { %p3416_p10 = pnand %p3415_p13, %p3409_p12 }
  0x37   : > { %3419 = shalt.err (!%p3416_p10)
}
  0x38   : > { %s3553_s24 = smov 320   ;;  %s3554_s29 = smov 20  }
  0x39   : > { %3080 = dma.hbm_to_vmem [thread:$0]  (!%p3728_p0), %s4306_s9, 10240, %s430_s15, [#allocation3], %s3553_s24, %s3553_s24, %s3554_s29  }
  0x3a   : > { %s3555_s26 = smov [#allocation5]   ;;  %s3420_s14 = scalar_lea.hbm %s4308_s11, 10240 }
  0x3b   : > { %s445_s25 = sshll.u32 %s3555_s26, 4  ;;  %p3421_p3 = scmp.ne.s32.totalorder %s4308_s11, %s3420_s14  ;;  %s446_s25 = int_to_ptr.vmem [resolvable:$true] %s445_s25 }
  0x3c   : > { %p3427_p13 = scmp.lt.u32.totalorder %s3420_s14, %s4308_s11 }
  0x3d   : > { %p3423_p9 = pnand %p3421_p3, %p3394_p2 }
  0x3f   : > { %p3424_p10 = pneg %p3423_p9 }
  0x41   : > { %p3429_p1 = pnand %p3427_p13, %p3424_p10 }
  0x43   : > { %3432 = shalt.err (!%p3429_p1)
}
  0x44   : > { %s3433_s15 = scalar_lea.vmem %s446_s25, 10240  ;;  %p3441_p7 = scmp.lt.s32.totalorder %s446_s25, %s446_s25 }
  0x45   : > { %p3434_p4 = scmp.ne.s32.totalorder %s446_s25, %s3433_s15  ;;  %p3442_p8 = scmp.lt.s32.totalorder %s3433_s15, %s3433_s15 }
  0x47   : > { %p3436_p5 = pnand %p3434_p4, %p3394_p2  ;;  %p3443_p11 = por %p3442_p8, %p3441_p7 }
  0x49   : > { %p3437_p6 = pneg %p3436_p5 }
  0x4b   : > { %p3444_p12 = pnand %p3443_p11, %p3437_p6 }
  0x4d   : > { %3447 = shalt.err (!%p3444_p12)
}
  0x4e   : > { %s3556_s13 = smov 64   ;;  %s3557_s20 = smov 4  }
  0x4f   : > { %3083 = dma.hbm_to_vmem [thread:$0]  (!%p3728_p0), %s4308_s11, 10240, %s446_s25, [#allocation6], %s3556_s13, %s3556_s13, %s3557_s20  }
  0x50   : > { %p4348_p3 = scmp.ne.s32.totalorder %s4344_s23, 0 }
  0x51   : > { %p4349_p9 = scmp.ne.s32.totalorder (!%p4348_p3), %s4345_s27, 0 }
  0x52   : > { %479 = sbr.rel (%p4348_p3) target bundleno = 2376 (0x948), region = 80 }
  0x59   : > { %3509 = dma.done.wait (%p4349_p9), [#allocation3], 10240  }
  0x5a   : > { %3511 = vsyncadd (%p4349_p9), [#allocation3], 4294957056 }
  0x5b   : > { %3513 = dma.done.wait (%p4349_p9), [#allocation6], 10240  }
  0x5c   : > { %3515 = vsyncadd (%p4349_p9), [#allocation6], 4294957056  ;;  %s528_s14 = sand.u32 1, %s3526_s19   ;;  %s2801_s17 = sshll.u32 %s3538_s22, 2  ;;  %v539_v0 = vlaneseq  ;;  %v3558_v2 = vmov 0.0  }
  0x5d   : > { %s2800_s23 = sshll.u32 %s528_s14, 5  ;;  %p532_p0 = scmp.lt.s32.totalorder %s2801_s17, 7 }
  0x5e   : > { %v540_v1 = vand.u32 127, %v539_v0  ;;  %s3794_s28 = scalar_lea.vmem [#allocation7], %s2800_s23  ;;  %p2804_p2 = scmp.ne.s32.totalorder %s3534_s21, 0 }
  0x5f   : > { %s4377_s17 = smov (!%p532_p0, %s2801_s17), 7 }
  0x60   : > { %vm541_vm0 = vcmp.lt.s32.totalorder %v540_v1, 64  ;;  %s2802_s24 = sshll.u32 %s4377_s17, 3  ;;  %547 = sbr.rel (%p2804_p2) target bundleno = 103 (0x67), region = 92 }
  0x61   : > { %v3789_v3 = vsel %vm541_vm0, 1.0, %v3558_v2  ;;  %s535_s16 = scalar_lea.vmem %s4297_s0, %s2802_s24 }
  0x62   : > { %v548_v4 = vld [vmem:[%s535_s16] sm:$0xff] (!%p2804_p2)  ;;  %v549_v5 = vld [vmem:[%s535_s16 + $0x8] sm:$0xff] (!%p2804_p2)  ;;  %v550_v6 = vld [vmem:[%s535_s16 + $0x10] sm:$0xff] (!%p2804_p2) }
  0x63   : > { %552 = vst [vmem:[%s3794_s28] sm:$0xff] (!%p2804_p2), %v548_v4  ;;  %553 = vst [vmem:[%s3794_s28 + $0x8] sm:$0xff] (!%p2804_p2), %v549_v5  ;;  %v551_v7 = vld [vmem:[%s535_s16 + $0x18] sm:$0xff] (!%p2804_p2) }
  0x64   : > { %554 = vst [vmem:[%s3794_s28 + $0x10] sm:$0xff] (!%p2804_p2), %v550_v6  ;;  %555 = vst [vmem:[%s3794_s28 + $0x18] sm:$0xff] (!%p2804_p2), %v551_v7 }
  0x67 PF: > { %s2928_s26 = sshll.u32 %s3534_s21, 7  ;;  %v3559_v8 = vmov 0   ;;  %s2807_s15 = sshll.u32 %s3534_s21, 1  ;;  %v3844_v31 = vshrl.u32 %v539_v0, 7  ;;  %v3563_v55 = vmov 1966171168  }
  0x68   : > { %s3805_s18 = scalar_lea.vmem %s4298_s1, %s2928_s26  ;;  %707 = vmatprep.mubr.bf16.mxu0 %v3559_v8  ;;  %s582_s7 = scalar_lea.vmem %s4299_s2, %s2807_s15  ;;  %v816_v56 = vunpack.c.l.s4 %v3563_v55  ;;  %vm740_vm1 = vcmask 261120   ;;  %vm742_vm2 = vcmask 523264   ;;  %vm744_vm3 = vcmask 785408  }
  0x69   : > { %v3186_v9 = vld [vmem:[%s3805_s18 + $0x4] ss:$8 sps:$4 sm:$0xff]   ;;  %v3188_v10 = vld [vmem:[%s3805_s18] ss:$8 sps:$4 sm:$0xff]   ;;  %v3189_v11 = vld [vmem:[%s3805_s18 + $0x14] ss:$8 sps:$4 sm:$0xff]   ;;  %s1311_s30 = scalar_lea.vmem %s4301_s4, %s3534_s21 }
  0x6a   : > { %675 = vmatprep.subr.bf16.mxu0 %v3186_v9  ;;  %v3191_v12 = vld [vmem:[%s3805_s18 + $0x10] ss:$8 sps:$4 sm:$0xff]   ;;  %v3192_v13 = vld [vmem:[%s3805_s18 + $0x24] ss:$8 sps:$4 sm:$0xff]   ;;  %v3194_v14 = vld [vmem:[%s3805_s18 + $0x20] ss:$8 sps:$4 sm:$0xff]   ;;  %v817_v59 = vunpack.c.0.s8 %v816_v56 }
  0x6b   : > { %676 = vmatpush1.bf16.msra.mxu0 %v3188_v10  ;;  %v3195_v15 = vld [vmem:[%s3805_s18 + $0x34] ss:$8 sps:$4 sm:$0xff]   ;;  %v3197_v16 = vld [vmem:[%s3805_s18 + $0x30] ss:$8 sps:$4 sm:$0xff]   ;;  %v3198_v17 = vld [vmem:[%s3805_s18 + $0x44] ss:$8 sps:$4 sm:$0xff]  }
  0x6c   : > { %677 = vmatprep.subr.bf16.mxu0 %v3189_v11  ;;  %v3200_v18 = vld [vmem:[%s3805_s18 + $0x40] ss:$8 sps:$4 sm:$0xff]   ;;  %v3201_v19 = vld [vmem:[%s3805_s18 + $0x54] ss:$8 sps:$4 sm:$0xff]   ;;  %v3203_v20 = vld [vmem:[%s3805_s18 + $0x50] ss:$8 sps:$4 sm:$0xff]   ;;  %v3899_v62 = vsub.s32 %v817_v59, %v3844_v31 }
  0x6d   : > { %v3204_v21 = vld [vmem:[%s3805_s18 + $0x64] ss:$8 sps:$4 sm:$0xff]   ;;  %v3206_v22 = vld [vmem:[%s3805_s18 + $0x60] ss:$8 sps:$4 sm:$0xff]   ;;  %v3207_v23 = vld [vmem:[%s3805_s18 + $0x74] ss:$8 sps:$4 sm:$0xff]  }
  0x6e   : > { %v3209_v24 = vld [vmem:[%s3805_s18 + $0x70] ss:$8 sps:$4 sm:$0xff]   ;;  %v3825_v25 = vld [vmem:[%s3794_s28] sm:$0xff]  ;;  %v3828_v26 = vld [vmem:[%s3794_s28 + $0x8] sm:$0xff]  ;;  %v3850_v32 = vsub.s32 0, %v3844_v31  ;;  %s3560_s8 = smov 32  }
  0x6f   : > { %678 = vmatpush1.bf16.msra.mxu0 %v3191_v12  ;;  %v560_v27 = vpack.c.bf16 %v3828_v26, %v3825_v25  ;;  %v3834_v28 = vld [vmem:[%s3794_s28 + $0x10] sm:$0xff]  ;;  %v3837_v29 = vld [vmem:[%s3794_s28 + $0x18] sm:$0xff]  ;;  %v583_v33 = vld [vmem:[%s582_s7] sm:$0x3]  ;;  %s3561_s17 = smov 64   ;;  %s3562_s23 = smov 96  }
  0x70   : > { %679 = vmatprep.subr.bf16.mxu0 %v3192_v13  ;;  %v561_v30 = vpack.c.bf16 %v3837_v29, %v3834_v28  ;;  %v588_v34 = vrot.slane %v583_v33, %v3850_v32  ;;  %v591_v47 = vsub.s32 1, %v3844_v31  ;;  %s2929_s24 = sshll.u32 %s3534_s21, 5  ;;  %s2930_s18 = smul.u32 320, %s3534_s21 }
  0x71   : > { %s3894_s16 = scalar_lea.vmem %s4300_s3, %s2929_s24  ;;  %s1404_s24 = scalar_lea.vmem %s4303_s6, %s3534_s21 }
  0x72   : > { %v592_v48 = vrot.slane %v583_v33, %v591_v47  ;;  %v3210_v53 = vld [vmem:[%s3894_s16] sm:$0xff]   ;;  %v3211_v54 = vld [vmem:[%s3894_s16 + $0x8] sm:$0xff]   ;;  %s4004_s15 = scalar_lea.vmem [#allocation2], %s2930_s18  ;;  %s4014_s13 = scalar_lea.vmem [#allocation5], %s2930_s18 }
  0x73   : > { %680 = vmatpush1.bf16.msra.mxu0 %v3194_v14  ;;  %3015 = vmatprep.subr.bf16.mxu1 %v3210_v53  ;;  %s1527_s29 = smul.u32 5, %s3534_s21  ;;  %s2111_s18 = scalar_lea.vmem %s4309_s12, %s3534_s21 }
  0x74   : > { %681 = vmatprep.subr.bf16.mxu0 %v3195_v15  ;;  %3016 = vmatpush3.bf16.msra.mxu1 %v3210_v53  ;;  %s4350_s20 = sld [smem:[#allocation21_spill]]  ;;  %p2920_p10 = scmp.ne.s32.totalorder %s3534_s21, 1 }
  0x75   : > { %3017 = vmatprep.subr.bf16.mxu1 %v3211_v54  ;;  %s1528_s26 = scalar_lea.vmem %s4307_s10, %s1527_s29  ;;  %s4352_s27 = sld [smem:[#allocation23_spill]] (!%p2920_p10) }
  0x76   : > { %s4353_s25 = sld [smem:[#allocation24_spill]] (!%p2920_p10) }
  0x77   : > { %682 = vmatpush1.bf16.msra.mxu0 %v3197_v16 }
  0x78   : > { %683 = vmatprep.subr.bf16.mxu0 %v3198_v17  ;;  %3018 = vmatpush3.bf16.msra.mxu1 %v3211_v54 }
  0x7a   : > { %s2510_s7 = scalar_lea.vmem %s4350_s20, %s3534_s21 }
  0x7b   : > { %684 = vmatpush1.bf16.msra.mxu0 %v3200_v18 }
  0x7c   : > { %685 = vmatprep.subr.bf16.mxu0 %v3201_v19 }
  0x7f   : > { %686 = vmatpush1.bf16.msra.mxu0 %v3203_v20 }
  0x80   : > { %687 = vmatprep.subr.bf16.mxu0 %v3204_v21 }
  0x83   : > { %688 = vmatpush1.bf16.msra.mxu0 %v3206_v22 }
  0x84   : > { %689 = vmatprep.subr.bf16.mxu0 %v3207_v23 }
  0x87   : > { %690 = vmatpush1.bf16.msra.mxu0 %v3209_v24 }
  0x8a   : > { %708 = vmatmul.mubr.bf16.vlgmr.msra.gmra.mrb[0].mxu0 %v560_v27 }
  0x8b   : > { %717 = vmatprep.mubr.bf16.mxu0 %v3559_v8 }
  0x92   : > { %718 = vmatmul.mubr.bf16.gmra.mrb[4].mxu0 %v561_v30 }
  0x93   : > { %1849 = vmatprep.mubr.bf16.mxu0 %v3559_v8 }
 0x15d   : > { %v709_v35 = vpop.f32.mrb[0].mxu0 }
 0x15e   : > { %v3853_v36 = vadd.f32 %v709_v35, %v588_v34  ;;  %v711_v37 = vpop.f32.mrb[1].mxu0 }
 0x15f   : > { %v713_v38 = vpop.f32.mrb[2].mxu0  ;;  %v3880_v50 = vadd.f32 %v711_v37, %v592_v48 }
 0x160   : > { %v715_v39 = vpop.f32.mrb[3].mxu0  ;;  %773 = vrot.lane.b32.xlu1 %v3853_v36, %s3560_s8  ;;  %761 = vrot.lane.b32.xlu0 %v3853_v36, %s3561_s17  ;;  %v3859_v40 = vadd.f32 %v713_v38, %v588_v34 }
 0x161   : > { %v3877_v49 = vadd.f32 %v715_v39, %v592_v48 }
 0x164   : > { %776 = vrot.lane.b32.xlu1 %v3859_v40, %s3561_s17  ;;  %764 = vrot.lane.b32.xlu0 %v3859_v40, %s3562_s23 }
 0x165   : > { %v719_v41 = vpop.f32.mrb[4].mxu0 }
 0x166   : > { %v720_v42 = vadd.f32 %v719_v41, %v588_v34  ;;  %v721_v43 = vpop.f32.mrb[5].mxu0 }
 0x167   : > { %v723_v44 = vpop.f32.mrb[6].mxu0  ;;  %v722_v51 = vadd.f32 %v721_v43, %v592_v48 }
 0x168   : > { %v724_v45 = vadd.f32 %v723_v44, %v588_v34  ;;  %v725_v46 = vpop.f32.mrb[7].mxu0  ;;  %779 = vrot.lane.b32.xlu0 %v720_v42, %s3562_s23 }
 0x169   : > { %v726_v52 = vadd.f32 %v725_v46, %v592_v48 }
 0x16a   : > { %767 = vrot.lane.b32.xlu1 %v724_v45, %s3560_s8 }
 0x16c   : > { %729 = vrot.lane.b32.xlu0 %v3859_v40, %s3560_s8 }
 0x16e   : > { %748 = vrot.lane.b32.xlu1 %v3853_v36, %s3562_s23 }
 0x170   : > { %733 = vrot.lane.b32.xlu0 %v720_v42, %s3561_s17 }
 0x172   : > { %751 = vrot.lane.b32.xlu1 %v720_v42, %s3560_s8 }
 0x174   : > { %737 = vrot.lane.b32.xlu0 %v724_v45, %s3562_s23 }
 0x176   : > { %754 = vrot.lane.b32.xlu1 %v724_v45, %s3561_s17 }
 0x178   : > { %786 = vrot.lane.b32.xlu0 %v3877_v49, %s3560_s8 }
 0x17a   : > { %801 = vrot.lane.b32.xlu1 %v3880_v50, %s3562_s23 }
 0x17c   : > { %790 = vrot.lane.b32.xlu0 %v722_v51, %s3561_s17 }
 0x17e   : > { %804 = vrot.lane.b32.xlu1 %v722_v51, %s3560_s8 }
 0x180   : > { %794 = vrot.lane.b32.xlu0 %v726_v52, %s3562_s23 }
 0x182   : > { %807 = vrot.lane.b32.xlu1 %v726_v52, %s3561_s17 }
 0x1d2   : > { %v774_v57 = vpop.permute.xlu1 %773  ;;  %v762_v58 = vpop.permute.xlu0 %761 }
 0x1d6   : > { %v765_v60 = vpop.permute.xlu0 %764  ;;  %v777_v61 = vpop.permute.xlu1 %776 }
 0x1d7   : > { %v770_v63 = vsel %vm740_vm1, %v762_v58, %v765_v60  ;;  %v782_v0 = vsel %vm740_vm1, %v774_v57, %v777_v61 }
 0x1d8   : > { %v771_v6 = vsel %vm742_vm2, %v770_v63, %v720_v42 }
 0x1da   : > { %v780_v1 = vpop.permute.xlu0 %779 }
 0x1db   : > { %v783_v2 = vsel %vm742_vm2, %v782_v0, %v780_v1 }
 0x1dc   : > { %v784_v4 = vsel %vm744_vm3, %v783_v2, %v724_v45  ;;  %v768_v5 = vpop.permute.xlu1 %767 }
 0x1dd   : > { %v912_v7 = vcombine.high %v784_v4, %v784_v4  ;;  %v919_v9 = vrot.slane %v784_v4, %v3899_v62  ;;  %v772_v10 = vsel %vm744_vm3, %v771_v6, %v768_v5 }
 0x1de   : > { %v814_v11 = vcombine.high %v772_v10, %v772_v10  ;;  %v821_v12 = vrot.slane %v772_v10, %v3899_v62  ;;  %v730_v13 = vpop.permute.xlu0 %729 }
 0x1df   : > { %v926_v14 = vrot.slane %v912_v7, %v3899_v62  ;;  %v927_v15 = vcombine.high %v919_v9, %v919_v9  ;;  %v935_v16 = vrot.slane %v919_v9, %v3899_v62  ;;  %v741_v42 = vsel %vm740_vm1, %v3853_v36, %v730_v13 }
 0x1e0   : > { %v828_v17 = vrot.slane %v814_v11, %v3899_v62  ;;  %v829_v18 = vcombine.high %v821_v12, %v821_v12  ;;  %v749_v19 = vpop.permute.xlu1 %748  ;;  %v837_v34 = vrot.slane %v821_v12, %v3899_v62 }
 0x1e1   : > { %v928_v20 = vcombine.high %v926_v14, %v926_v14  ;;  %v942_v21 = vrot.slane %v926_v14, %v3899_v62  ;;  %v949_v22 = vrot.slane %v927_v15, %v3899_v62  ;;  %v957_v30 = vcombine.high %v935_v16, %v935_v16 }
 0x1e2   : > { %v830_v23 = vcombine.high %v828_v17, %v828_v17  ;;  %v734_v24 = vpop.permute.xlu0 %733  ;;  %v844_v37 = vrot.slane %v828_v17, %v3899_v62  ;;  %v851_v38 = vrot.slane %v829_v18, %v3899_v62  ;;  %v964_v44 = vrot.slane %v935_v16, %v3850_v32 }
 0x1e3   : > { %v956_v27 = vrot.slane %v928_v20, %v3899_v62  ;;  %v959_v33 = vcombine.high %v949_v22, %v949_v22  ;;  %v958_v35 = vcombine.high %v942_v21, %v942_v21  ;;  %v968_v45 = vrot.slane %v949_v22, %v3850_v32 }
 0x1e4   : > { %v858_v39 = vrot.slane %v830_v23, %v3899_v62  ;;  %v752_v41 = vpop.permute.xlu1 %751  ;;  %v972_v48 = vrot.slane %v957_v30, %v3850_v32  ;;  %v980_v52 = vrot.slane %v942_v21, %v3850_v32  ;;  %v859_v53 = vcombine.high %v837_v34, %v837_v34 }
 0x1e5   : > { %v960_v43 = vcombine.high %v956_v27, %v956_v27  ;;  %v976_v51 = vrot.slane %v959_v33, %v3850_v32  ;;  %v984_v55 = vrot.slane %v956_v27, %v3850_v32  ;;  %v988_v56 = vrot.slane %v958_v35, %v3850_v32 }
 0x1e6   : > { %v862_v46 = vcombine.high %v858_v39, %v858_v39  ;;  %v738_v54 = vpop.permute.xlu0 %737  ;;  %v860_v57 = vcombine.high %v844_v37, %v844_v37  ;;  %v861_v36 = vcombine.high %v851_v38, %v851_v38  ;;  %v866_v59 = vrot.slane %v837_v34, %v3850_v32 }
 0x1e7   : > { %v757_v61 = vsel %vm740_vm1, %v749_v19, %v3859_v40  ;;  %v743_v63 = vsel %vm742_vm2, %v741_v42, %v734_v24  ;;  %v992_v0 = vrot.slane %v960_v43, %v3850_v32  ;;  %v870_v1 = vrot.slane %v851_v38, %v3850_v32 }
 0x1e8   : > { %v755_v58 = vpop.permute.xlu1 %754  ;;  %v894_v60 = vrot.slane %v862_v46, %v3850_v32  ;;  %v758_v2 = vsel %vm742_vm2, %v757_v61, %v752_v41  ;;  %v745_v4 = vsel %vm744_vm3, %v743_v63, %v738_v54  ;;  %v874_v5 = vrot.slane %v859_v53, %v3850_v32 }
 0x1e9   : > { %v882_v6 = vrot.slane %v844_v37, %v3850_v32  ;;  %v746_v7 = vmul.f32 0.70710677, %v745_v4  ;;  %v759_v9 = vsel %vm744_vm3, %v758_v2, %v755_v58  ;;  %v878_v10 = vrot.slane %v861_v36, %v3850_v32 }
 0x1ea   : > { %v886_v40 = vrot.slane %v858_v39, %v3850_v32  ;;  %v890_v11 = vrot.slane %v860_v57, %v3850_v32  ;;  %v760_v12 = vmul.f32 0.70710677, %v759_v9 }
 0x1eb   : > { %v910_v13 = vmul.f32 %v894_v60, %v746_v7  ;;  %v903_v14 = vmul.f32 %v866_v59, %v746_v7  ;;  %v904_v15 = vmul.f32 %v870_v1, %v746_v7  ;;  %v905_v16 = vmul.f32 %v874_v5, %v746_v7  ;;  %v787_v1 = vpop.permute.xlu0 %786 }
 0x1ec   : > { %v906_v17 = vmul.f32 %v878_v10, %v746_v7  ;;  %v907_v18 = vmul.f32 %v882_v6, %v746_v7  ;;  %v908_v19 = vmul.f32 %v886_v40, %v746_v7  ;;  %v909_v20 = vmul.f32 %v890_v11, %v746_v7  ;;  %v802_v9 = vpop.permute.xlu1 %801 }
 0x1ed   : > { %v1001_v21 = vmul.f32 %v964_v44, %v760_v12  ;;  %v1002_v22 = vmul.f32 %v968_v45, %v760_v12  ;;  %v1003_v23 = vmul.f32 %v972_v48, %v760_v12  ;;  %v1004_v24 = vmul.f32 %v976_v51, %v760_v12 }
 0x1ee   : > { %v1005_v27 = vmul.f32 %v980_v52, %v760_v12  ;;  %v1006_v30 = vmul.f32 %v984_v55, %v760_v12  ;;  %v1007_v33 = vmul.f32 %v988_v56, %v760_v12  ;;  %v1008_v34 = vmul.f32 %v992_v0, %v760_v12 }
 0x1ef   : > { %v1009_v35 = vadd.f32 %v1001_v21, %v903_v14  ;;  %v1010_v37 = vadd.f32 %v1002_v22, %v904_v15  ;;  %v1011_v38 = vadd.f32 %v1003_v23, %v905_v16  ;;  %v1012_v39 = vadd.f32 %v1004_v24, %v906_v17  ;;  %v791_v40 = vpop.permute.xlu0 %790 }
 0x1f0   : > { %v1013_v41 = vadd.f32 %v1005_v27, %v907_v18  ;;  %v1014_v42 = vadd.f32 %v1006_v30, %v908_v19  ;;  %v1015_v43 = vadd.f32 %v1007_v33, %v909_v20  ;;  %v1016_v46 = vadd.f32 %v1008_v34, %v910_v13  ;;  %v805_v15 = vpop.permute.xlu1 %804 }
 0x1f1   : > { %v797_v19 = vsel %vm740_vm1, %v3880_v50, %v787_v1 }
 0x1f2   : > { %v1017_v53 = vmax.f32 %v1009_v35, %v1013_v41  ;;  %v1018_v54 = vmax.f32 %v1010_v37, %v1014_v42  ;;  %v1019_v57 = vmax.f32 %v1011_v38, %v1015_v43  ;;  %v1020_v36 = vmax.f32 %v1012_v39, %v1016_v46 }
 0x1f3   : > { %v795_v18 = vpop.permute.xlu0 %794  ;;  %v798_v22 = vsel %vm742_vm2, %v797_v19, %v791_v40 }
 0x1f4   : > { %v1021_v44 = vmax.f32 %v1017_v53, %v1018_v54  ;;  %v1022_v45 = vmax.f32 %v1019_v57, %v1020_v36  ;;  %v799_v24 = vsel %vm744_vm3, %v798_v22, %v795_v18  ;;  %v808_v33 = vpop.permute.xlu1 %807 }
 0x1f6   : > { %v1023_v48 = vmax.f32 %v1021_v44, %v1022_v45 }
 0x1f8   : > { %v1024_v51 = vsub.f32 %v1009_v35, %v1023_v48  ;;  %v1025_v52 = vsub.f32 %v1010_v37, %v1023_v48  ;;  %v1026_v55 = vsub.f32 %v1011_v38, %v1023_v48  ;;  %v1027_v56 = vsub.f32 %v1012_v39, %v1023_v48 }
 0x1f9   : > { %v1028_v60 = vsub.f32 %v1013_v41, %v1023_v48  ;;  %v1029_v63 = vsub.f32 %v1014_v42, %v1023_v48  ;;  %v1030_v2 = vsub.f32 %v1015_v43, %v1023_v48  ;;  %v1031_v5 = vsub.f32 %v1016_v46, %v1023_v48 }
 0x1fa   : > { %v1032_v58 = vmul.f32 1.442695, %v1024_v51  ;;  %v1034_v59 = vmul.f32 1.442695, %v1025_v52  ;;  %v1036_v61 = vmul.f32 1.442695, %v1026_v55  ;;  %v810_v35 = vsel %vm740_vm1, %v802_v9, %v3877_v49 }
 0x1fb   : > { %v1038_v0 = vmul.f32 1.442695, %v1027_v56  ;;  %v1040_v4 = vmul.f32 1.442695, %v1028_v60  ;;  %v1042_v6 = vmul.f32 1.442695, %v1029_v63  ;;  %v1065_v37 = vcombine.high %v799_v24, %v799_v24 }
 0x1fc   : > { %3310 = vpow2.f32 %v1032_v58  ;;  %v1044_v7 = vmul.f32 1.442695, %v1030_v2  ;;  %v1046_v10 = vmul.f32 1.442695, %v1031_v5  ;;  %v811_v38 = vsel %vm742_vm2, %v810_v35, %v805_v15 }
 0x1fd   : > { %3312 = vpow2.f32 %v1034_v59  ;;  %v812_v50 = vsel %vm744_vm3, %v811_v38, %v808_v33  ;;  %v1072_v43 = vrot.slane %v799_v24, %v3899_v62  ;;  %v1079_v46 = vrot.slane %v1065_v37, %v3899_v62 }
 0x1fe   : > { %3314 = vpow2.f32 %v1036_v61  ;;  %v1177_v53 = vrot.slane %v812_v50, %v3899_v62  ;;  %v1170_v36 = vcombine.high %v812_v50, %v812_v50 }
 0x1ff   : > { %3316 = vpow2.f32 %v1038_v0  ;;  %v1080_v54 = vcombine.high %v1072_v43, %v1072_v43  ;;  %v1081_v57 = vcombine.high %v1079_v46, %v1079_v46  ;;  %v1088_v49 = vrot.slane %v1072_v43, %v3899_v62 }
 0x200   : > { %3318 = vpow2.f32 %v1040_v4  ;;  %v1185_v44 = vcombine.high %v1177_v53, %v1177_v53  ;;  %v1095_v45 = vrot.slane %v1079_v46, %v3899_v62  ;;  %v1193_v51 = vrot.slane %v1177_v53, %v3899_v62 }
 0x201   : > { %3320 = vpow2.f32 %v1042_v6  ;;  %v1102_v48 = vrot.slane %v1080_v54, %v3899_v62  ;;  %v1109_v52 = vrot.slane %v1081_v57, %v3899_v62  ;;  %v1110_v55 = vcombine.high %v1088_v49, %v1088_v49 }
 0x202   : > { %3322 = vpow2.f32 %v1044_v7  ;;  %v1184_v56 = vrot.slane %v1170_v36, %v3899_v62  ;;  %v1207_v58 = vrot.slane %v1185_v44, %v3899_v62  ;;  %v1111_v59 = vcombine.high %v1095_v45, %v1095_v45 }
 0x203   : > { %3324 = vpow2.f32 %v1046_v10  ;;  %v1112_v61 = vcombine.high %v1102_v48, %v1102_v48  ;;  %v1117_v63 = vrot.slane %v1088_v49, %v3850_v32  ;;  %v1121_v0 = vrot.slane %v1102_v48, %v3850_v32 }
 0x204   : > { %v1215_v1 = vcombine.high %v1193_v51, %v1193_v51  ;;  %v1113_v6 = vcombine.high %v1109_v52, %v1109_v52  ;;  %v1125_v7 = vrot.slane %v1110_v55, %v3850_v32  ;;  %v1186_v9 = vcombine.high %v1184_v56, %v1184_v56 }
 0x205   : > { %v1217_v10 = vcombine.high %v1207_v58, %v1207_v58  ;;  %v1222_v40 = vrot.slane %v1193_v51, %v3850_v32  ;;  %v1226_v18 = vrot.slane %v1207_v58, %v3850_v32  ;;  %v1129_v19 = vrot.slane %v1112_v61, %v3850_v32 }
 0x206   : > { %v3311_v11 = vpop.eup %3310  ;;  %v1133_v33 = vrot.slane %v1095_v45, %v3850_v32  ;;  %v1137_v43 = vrot.slane %v1109_v52, %v3850_v32  ;;  %v1141_v49 = vrot.slane %v1111_v59, %v3850_v32  ;;  %v3212_v45 = vld [vmem:[%s3894_s16 + $0x10] sm:$0xff]   ;;  %v1145_v52 = vrot.slane %v1113_v6, %v3850_v32 }
 0x207   : > { %v3313_v12 = vpop.eup %3312  ;;  %v1234_v35 = vrot.slane %v1217_v10, %v3850_v32  ;;  %3019 = vmatprep.subr.bf16.mxu1 %v3212_v45 }
 0x208   : > { %v1048_v13 = vadd.f32 %v3313_v12, %v3311_v11  ;;  %v3315_v14 = vpop.eup %3314  ;;  %3020 = vmatpush3.bf16.msra.mxu1 %v3212_v45 }
 0x209   : > { %v3317_v17 = vpop.eup %3316 }
 0x20a   : > { %v1049_v16 = vadd.f32 %v3315_v14, %v1048_v13  ;;  %v3319_v21 = vpop.eup %3318 }
 0x20b   : > { %v3321_v27 = vpop.eup %3320 }
 0x20c   : > { %v1050_v20 = vadd.f32 %v3317_v17, %v1049_v16  ;;  %v3323_v34 = vpop.eup %3322 }
 0x20d   : > { %v3950_v41 = vpop.eup %3324 }
 0x20e   : > { %v1051_v23 = vadd.f32 %v3319_v21, %v1050_v20  ;;  %v1200_v20 = vrot.slane %v1184_v56, %v3899_v62 }
 0x210   : > { %v1052_v30 = vadd.f32 %v3321_v27, %v1051_v23  ;;  %v1216_v46 = vcombine.high %v1200_v20, %v1200_v20 }
 0x212   : > { %v1053_v39 = vadd.f32 %v3323_v34, %v1052_v30  ;;  %v1246_v56 = vrot.slane %v1216_v46, %v3850_v32 }
 0x214   : > { %v1054_v42 = vadd.f32 %v3950_v41, %v1053_v39 }
 0x216   : > { %3326 = vrcp.f32 %v1054_v42 }
 0x220   : > { %v3327_v60 = vpop.eup %3326 }
 0x221   : > { %v1056_v2 = vmul.f32 %v3327_v60, %v3311_v11  ;;  %v1057_v4 = vmul.f32 %v3327_v60, %v3313_v12  ;;  %v1058_v5 = vmul.f32 %v3327_v60, %v3315_v14  ;;  %v1059_v13 = vmul.f32 %v3327_v60, %v3317_v17 }
 0x222   : > { %v1230_v11 = vrot.slane %v1215_v1, %v3850_v32  ;;  %v1060_v14 = vmul.f32 %v3327_v60, %v3319_v21  ;;  %v1061_v30 = vmul.f32 %v3327_v60, %v3321_v27  ;;  %v1214_v17 = vrot.slane %v1186_v9, %v3899_v62  ;;  %v3213_v9 = vld [vmem:[%s3894_s16 + $0x18] sm:$0xff]  }
 0x223   : > { %v1154_v15 = vmul.f32 %v1117_v63, %v1056_v2  ;;  %v1155_v16 = vmul.f32 %v1121_v0, %v1057_v4  ;;  %v1259_v12 = vmul.f32 %v1222_v40, %v1056_v2  ;;  %v1156_v22 = vmul.f32 %v1125_v7, %v1058_v5  ;;  %3021 = vmatprep.subr.bf16.mxu1 %v3213_v9 }
 0x224   : > { %v1260_v24 = vmul.f32 %v1226_v18, %v1057_v4  ;;  %v1157_v37 = vmul.f32 %v1129_v19, %v1059_v13  ;;  %v1261_v39 = vmul.f32 %v1230_v11, %v1058_v5  ;;  %v1062_v42 = vmul.f32 %v3327_v60, %v3323_v34  ;;  %3022 = vmatpush3.bf16.msra.mxu1 %v3213_v9 }
 0x225   : > { %v1162_v23 = vadd.f32 %v1155_v16, %v1154_v15  ;;  %v1238_v21 = vrot.slane %v1200_v20, %v3850_v32  ;;  %v1158_v53 = vmul.f32 %v1133_v33, %v1060_v14  ;;  %v1262_v27 = vmul.f32 %v1234_v35, %v1059_v13  ;;  %v2826_v35 = vld [vmem:[%s1311_s30] ss:$0 sm:$0xff] }
 0x226   : > { %v1267_v50 = vadd.f32 %v1260_v24, %v1259_v12  ;;  %v1218_v62 = vcombine.high %v1214_v17, %v1214_v17  ;;  %v1242_v36 = vrot.slane %v1214_v17, %v3850_v32  ;;  %v1063_v44 = vmul.f32 %v3327_v60, %v3950_v41 }
 0x227   : > { %v1163_v38 = vadd.f32 %v1162_v23, %v1156_v22  ;;  %v1159_v48 = vmul.f32 %v1137_v43, %v1061_v30  ;;  %v1263_v34 = vmul.f32 %v1238_v21, %v1060_v14  ;;  %v1160_v58 = vmul.f32 %v1141_v49, %v1062_v42  ;;  %v3217_v49 = vld [vmem:[%s4004_s15 + $0x8] ss:$20 sps:$4 sm:$0xff]  }
 0x228   : > { %v1268_v57 = vadd.f32 %v1267_v50, %v1261_v39  ;;  %v1264_v63 = vmul.f32 %v1242_v36, %v1061_v30  ;;  %v1250_v0 = vrot.slane %v1218_v62, %v3850_v32  ;;  %v1265_v1 = vmul.f32 %v1246_v56, %v1062_v42  ;;  %v3219_v62 = vld [vmem:[%s4004_s15 + $0xc] ss:$20 sps:$4 sm:$0xff]  }
 0x229   : > { %v1164_v54 = vadd.f32 %v1163_v38, %v1157_v37  ;;  %v1161_v60 = vmul.f32 %v1145_v52, %v1063_v44  ;;  %v3222_v36 = vld [vmem:[%s4004_s15 + $0x2c] ss:$20 sps:$4 sm:$0xff]   ;;  %1817 = vmatprep.subr.bf16.mxu0 %v3219_v62 }
 0x22a   : > { %v1269_v55 = vadd.f32 %v1268_v57, %v1262_v27  ;;  %v1266_v5 = vmul.f32 %v1250_v0, %v1063_v44  ;;  %1818 = vmatpush1.bf16.msra.mxu0 %v3217_v49  ;;  %v3225_v44 = vld [vmem:[%s4004_s15 + $0x34] ss:$20 sps:$4 sm:$0xff]  }
 0x22b   : > { %v1165_v51 = vadd.f32 %v1164_v54, %v1158_v53  ;;  %1819 = vmatprep.subr.bf16.mxu0 %v3225_v44 }
 0x22c   : > { %v1270_v59 = vadd.f32 %v1269_v55, %v1263_v34 }
 0x22d   : > { %v1166_v61 = vadd.f32 %v1165_v51, %v1159_v48 }
 0x22e   : > { %v1271_v41 = vadd.f32 %v1270_v59, %v1264_v63 }
 0x22f   : > { %v1167_v2 = vadd.f32 %v1166_v61, %v1160_v58 }
 0x230   : > { %v1272_v7 = vadd.f32 %v1271_v41, %v1265_v1 }
 0x231   : > { %v1168_v4 = vadd.f32 %v1167_v2, %v1161_v60 }
 0x232   : > { %v1273_v6 = vadd.f32 %v1272_v7, %v1266_v5 }
 0x234   : > { %v3176_v10 = vpack.i.bf16 %v1273_v6, %v1168_v4  ;;  %v3171_v40 = vpack.i.bf16 %v1168_v4, %v1273_v6 }
 0x236   : > { %3177 = vrot.lane.b32.xlu1 %v3176_v10, %s3562_s23  ;;  %3172 = vrot.lane.b32.xlu0 %v3171_v40, %s3560_s8  ;;  %v3231_v40 = vld [vmem:[%s4004_s15 + $0x5c] ss:$20 sps:$4 sm:$0xff]   ;;  %s1402_s8 = scalar_lea.vmem %s4302_s5, %s3534_s21  ;;  %s4351_s23 = sld [smem:[#allocation22_spill]] }
 0x23a   : > { %3182 = vrot.lane.b32.xlu0 %v3176_v10, %s3561_s17  ;;  %v3226_v10 = vld [vmem:[%s4004_s15 + $0x50] ss:$20 sps:$4 sm:$0xff]  }
 0x2a8   : > { %v3178_v13 = vpop.permute.xlu1 %3177  ;;  %v3173_v15 = vpop.permute.xlu0 %3172 }
 0x2a9   : > { %v3179_v16 = vunpack.i.l.bf16 %v3178_v13  ;;  %v3174_v18 = vunpack.i.l.bf16 %v3173_v15  ;;  %v3180_v14 = vunpack.i.h.bf16 %v3178_v13  ;;  %v3175_v22 = vunpack.i.h.bf16 %v3173_v15  ;;  %v3229_v13 = vld [vmem:[%s4004_s15 + $0x58] ss:$20 sps:$4 sm:$0xff]   ;;  %v3234_v15 = vld [vmem:[%s4004_s15 + $0x7c] ss:$20 sps:$4 sm:$0xff]  }
 0x2ab   : > { %v1278_v19 = vsel %vm740_vm1, %v1168_v4, %v3174_v18  ;;  %v1283_v20 = vsel %vm740_vm1, %v3179_v16, %v1273_v6  ;;  %v3228_v6 = vld [vmem:[%s4004_s15 + $0x54] ss:$20 sps:$4 sm:$0xff]   ;;  %v3232_v16 = vld [vmem:[%s4004_s15 + $0x78] ss:$20 sps:$4 sm:$0xff]  }
 0x2ac   : > { %v3183_v11 = vpop.permute.xlu0 %3182  ;;  %v1298_v12 = vpack.c.bf16 %v1283_v20, %v1278_v19  ;;  %v3237_v18 = vld [vmem:[%s4004_s15 + $0x84] ss:$20 sps:$4 sm:$0xff]   ;;  %v3235_v19 = vld [vmem:[%s4004_s15 + $0x80] ss:$20 sps:$4 sm:$0xff]  }
 0x2ad   : > { %v3185_v23 = vunpack.i.h.bf16 %v3183_v11  ;;  %v3184_v24 = vunpack.i.l.bf16 %v3183_v11  ;;  %v3240_v20 = vld [vmem:[%s4004_s15 + $0xa4] ss:$20 sps:$4 sm:$0xff]   ;;  %v3238_v11 = vld [vmem:[%s4004_s15 + $0xa0] ss:$20 sps:$4 sm:$0xff]  }
 0x2ae   : > { %3023 = vmatprep.mubr.msk.bf16.mxu1 %vm742_vm2, %v1298_v12  ;;  %v3243_v12 = vld [vmem:[%s4004_s15 + $0xac] ss:$20 sps:$4 sm:$0xff]  }
 0x2af   : > { %v1290_v30 = vsel %vm740_vm1, %v3184_v24, %v3180_v14  ;;  %v1297_v33 = vsel %vm740_vm1, %v3175_v22, %v3185_v23  ;;  %v3241_v14 = vld [vmem:[%s4004_s15 + $0xa8] ss:$20 sps:$4 sm:$0xff]   ;;  %v3246_v22 = vld [vmem:[%s4004_s15 + $0xcc] ss:$20 sps:$4 sm:$0xff]  }
 0x2b0   : > { %v1299_v17 = vpack.c.bf16 %v1297_v33, %v1290_v30  ;;  %v3244_v23 = vld [vmem:[%s4004_s15 + $0xc8] ss:$20 sps:$4 sm:$0xff]   ;;  %v3247_v30 = vld [vmem:[%s4004_s15 + $0xd0] ss:$20 sps:$4 sm:$0xff]  }
 0x2b1   : > { %v3249_v24 = vld [vmem:[%s4004_s15 + $0xd4] ss:$20 sps:$4 sm:$0xff]   ;;  %v3250_v33 = vld [vmem:[%s4004_s15 + $0xf0] ss:$20 sps:$4 sm:$0xff]  }
 0x2b2   : > { %3024 = vmatmul.mubr.msk.bf16.vlgmr.msra.gmra.mrb[0].mxu1 %vm742_vm2, %v1299_v17  ;;  %v3252_v17 = vld [vmem:[%s4004_s15 + $0xf4] ss:$20 sps:$4 sm:$0xff]  }
 0x2b3   : > { %1796 = vmatprep.mubr.bf16.mxu1 %v3559_v8 }
 0x385   : > { %v3025_v37 = vpop.f32.mrb[0].mxu1 }
 0x386   : > { %v1383_v38 = vpop.f32.mrb[1].mxu1  ;;  %v1392_v53 = vadd.f32 %v3025_v37, %v2826_v35  ;;  %v3255_v37 = vld [vmem:[%s4004_s15 + $0xfc] ss:$20 sps:$4 sm:$0xff]  }
 0x387   : > { %v1384_v39 = vadd.f32 %v2826_v35, %v1383_v38  ;;  %v3026_v50 = vpop.f32.mrb[2].mxu1  ;;  %v3258_v38 = vld [vmem:[%s4004_s15 + $0x11c] ss:$20 sps:$4 sm:$0xff]  }
 0x388   : > { %v1386_v42 = vpop.f32.mrb[3].mxu1  ;;  %v1395_v43 = vadd.f32 %v3026_v50, %v2826_v35  ;;  %v1400_v57 = vadd.f32 %v1392_v53, %v3834_v28  ;;  %v3223_v28 = vld [vmem:[%s4004_s15 + $0x30] ss:$20 sps:$4 sm:$0xff]   ;;  %v3256_v50 = vld [vmem:[%s4004_s15 + $0x118] ss:$20 sps:$4 sm:$0xff]  }
 0x389   : > { %v1387_v46 = vadd.f32 %v2826_v35, %v1386_v42  ;;  %v1398_v21 = vadd.f32 %v1384_v39, %v3825_v25  ;;  %v3214_v25 = vld [vmem:[%s4004_s15] ss:$20 sps:$4 sm:$0xff]   ;;  %1820 = vmatpush1.bf16.msra.mxu0 %v3223_v28  ;;  %v3253_v35 = vld [vmem:[%s4004_s15 + $0xf8] ss:$20 sps:$4 sm:$0xff]  }
 0x38a   : > { %v1401_v27 = vadd.f32 %v1395_v43, %v3837_v29  ;;  %v3220_v29 = vld [vmem:[%s4004_s15 + $0x28] ss:$20 sps:$4 sm:$0xff]   ;;  %1821 = vmatprep.subr.bf16.mxu0 %v3231_v40  ;;  %v3261_v39 = vld [vmem:[%s4004_s15 + $0x124] ss:$20 sps:$4 sm:$0xff]   ;;  %v3259_v42 = vld [vmem:[%s4004_s15 + $0x120] ss:$20 sps:$4 sm:$0xff]  }
 0x38b   : > { %1406 = vadd.xlane.f32.xlu1 %v1398_v21  ;;  %v1399_v54 = vadd.f32 %v1387_v46, %v3828_v26  ;;  %v3216_v26 = vld [vmem:[%s4004_s15 + $0x4] ss:$20 sps:$4 sm:$0xff]   ;;  %v3275_v40 = vld [vmem:[%s4014_s13 + $0x8] sm:$0xff]  }
 0x38c   : > { %1764 = vmatprep.subr.bf16.mxu1 %v3216_v26  ;;  %v3262_v43 = vld [vmem:[%s4004_s15 + $0x10] ss:$20 sps:$4 sm:$0xff]  }
 0x38d   : > { %1408 = vadd.xlane.f32.xlu0 %v1399_v54  ;;  %1765 = vmatpush1.bf16.msra.mxu1 %v3214_v25  ;;  %v3270_v46 = vld [vmem:[%s4014_s13 + $0x40] sm:$0xff]  }
 0x38e   : > { %1766 = vmatprep.subr.bf16.mxu1 %v3222_v36  ;;  %1822 = vmatpush1.bf16.msra.mxu0 %v3229_v13 }
 0x38f   : > { %1412 = vadd.xlane.f32.xlu1 %v1401_v27  ;;  %1823 = vmatprep.subr.bf16.mxu0 %v3237_v18  ;;  %v3268_v18 = vld [vmem:[%s4004_s15 + $0x100] ss:$20 sps:$4 sm:$0xff]  }
 0x391   : > { %1410 = vadd.xlane.f32.xlu0 %v1400_v57  ;;  %1767 = vmatpush1.bf16.msra.mxu1 %v3220_v29 }
 0x392   : > { %1768 = vmatprep.subr.bf16.mxu1 %v3228_v6  ;;  %1824 = vmatpush1.bf16.msra.mxu0 %v3235_v19  ;;  %v3274_v6 = vld [vmem:[%s4014_s13 + $0x48] sm:$0xff]  }
 0x393   : > { %1825 = vmatprep.subr.bf16.mxu0 %v3243_v12  ;;  %v3269_v19 = vld [vmem:[%s4004_s15 + $0x128] ss:$20 sps:$4 sm:$0xff]  }
 0x394   : > { %v3276_v12 = vld [vmem:[%s4014_s13 + $0xc8] sm:$0xff]  }
 0x395   : > { %1769 = vmatpush1.bf16.msra.mxu1 %v3226_v10 }
 0x396   : > { %1770 = vmatprep.subr.bf16.mxu1 %v3234_v15  ;;  %1826 = vmatpush1.bf16.msra.mxu0 %v3241_v14  ;;  %v3265_v15 = vld [vmem:[%s4004_s15 + $0x88] ss:$20 sps:$4 sm:$0xff]  }
 0x397   : > { %1827 = vmatprep.subr.bf16.mxu0 %v3249_v24  ;;  %v3277_v14 = vld [vmem:[%s4014_s13 + $0x88] sm:$0xff]   ;;  %v3280_v24 = vld [vmem:[%s4014_s13 + $0xd0] sm:$0xff]  }
 0x399   : > { %1771 = vmatpush1.bf16.msra.mxu1 %v3232_v16  ;;  %v3267_v16 = vld [vmem:[%s4004_s15 + $0xd8] ss:$20 sps:$4 sm:$0xff]  }
 0x39a   : > { %1772 = vmatprep.subr.bf16.mxu1 %v3240_v20  ;;  %1828 = vmatpush1.bf16.msra.mxu0 %v3247_v30  ;;  %v3272_v20 = vld [vmem:[%s4014_s13 + $0xc0] sm:$0xff]   ;;  %v3281_v30 = vld [vmem:[%s4014_s13 + $0x90] sm:$0xff]  }
 0x39b   : > { %1829 = vmatprep.subr.bf16.mxu0 %v3255_v37  ;;  %v3285_v37 = vld [vmem:[%s4014_s13 + $0x98] sm:$0xff]  }
 0x39d   : > { %1773 = vmatpush1.bf16.msra.mxu1 %v3238_v11  ;;  %v3273_v11 = vld [vmem:[%s4014_s13 + $0x80] sm:$0xff]  }
 0x39e   : > { %1774 = vmatprep.subr.bf16.mxu1 %v3246_v22  ;;  %1830 = vmatpush1.bf16.msra.mxu0 %v3253_v35  ;;  %v3278_v22 = vld [vmem:[%s4014_s13 + $0x50] sm:$0xff]   ;;  %v3284_v35 = vld [vmem:[%s4014_s13 + $0xd8] sm:$0xff]  }
 0x39f   : > { %1831 = vmatprep.subr.bf16.mxu0 %v3261_v39  ;;  %v3287_v39 = vld [vmem:[%s4014_s13 + $0x20] sm:$0xff]  }
 0x3a1   : > { %1775 = vmatpush1.bf16.msra.mxu1 %v3244_v23  ;;  %v3279_v23 = vld [vmem:[%s4014_s13 + $0x10] sm:$0xff]  }
 0x3a2   : > { %1776 = vmatprep.subr.bf16.mxu1 %v3252_v17  ;;  %1832 = vmatpush1.bf16.msra.mxu0 %v3259_v42  ;;  %v3283_v17 = vld [vmem:[%s4014_s13 + $0x18] sm:$0xff]   ;;  %v3289_v42 = vld [vmem:[%s4014_s13 + $0xa0] sm:$0xff]  }
 0x3a3   : > { %2949 = vmatprep.subr.bf16.mxu0 %v3270_v46  ;;  %v3291_v46 = vld [vmem:[%s4014_s13 + $0x28] sm:$0xff]  }
 0x3a5   : > { %1777 = vmatpush1.bf16.msra.mxu1 %v3250_v33  ;;  %v3282_v33 = vld [vmem:[%s4014_s13 + $0x58] sm:$0xff]  }
 0x3a6   : > { %1778 = vmatprep.subr.bf16.mxu1 %v3258_v38  ;;  %v3286_v38 = vld [vmem:[%s4014_s13 + $0x60] sm:$0xff]  }
 0x3a9   : > { %1779 = vmatpush1.bf16.msra.mxu1 %v3256_v50  ;;  %v3288_v50 = vld [vmem:[%s4014_s13 + $0xe0] sm:$0xff]  }
 0x3aa   : > { %3027 = vmatprep.subr.bf16.mxu1 %v3262_v43 }
 0x418   : > { %v1407_v45 = vpop.xlane.xlu1 %1406 }
 0x419   : > { %v1414_v48 = vmul.f32 0.015625, %v1407_v45  ;;  %v2833_v45 = vld [vmem:[%s1402_s8] ss:$0 sm:$0xff] }
 0x41a   : > { %v1409_v51 = vpop.xlane.xlu0 %1408 }
 0x41b   : > { %v1418_v34 = vsub.f32 %v1398_v21, %v1414_v48  ;;  %v1415_v55 = vmul.f32 0.015625, %v1409_v51 }
 0x41c   : > { %v1413_v52 = vpop.xlane.xlu1 %1412 }
 0x41d   : > { %v4017_v56 = vmul.f32 %v3789_v3, %v1418_v34  ;;  %v1419_v58 = vsub.f32 %v1399_v54, %v1415_v55  ;;  %v1417_v61 = vmul.f32 0.015625, %v1413_v52  ;;  %v2834_v52 = vld [vmem:[%s1404_s24] ss:$0 sm:$0xff]  ;;  %s2512_s24 = scalar_lea.vmem %s4351_s23, %s3534_s21 }
 0x41e   : > { %v1411_v63 = vpop.xlane.xlu0 %1410 }
 0x41f   : > { %v4020_v59 = vmul.f32 %v3789_v3, %v1419_v58  ;;  %v1421_v0 = vsub.f32 %v1401_v27, %v1417_v61  ;;  %v1416_v1 = vmul.f32 0.015625, %v1411_v63  ;;  %v1426_v41 = vmul.f32 %v4017_v56, %v4017_v56 }
 0x421   : > { %v4025_v60 = vmul.f32 %v3789_v3, %v1421_v0  ;;  %v1420_v2 = vsub.f32 %v1400_v57, %v1416_v1  ;;  %1430 = vadd.xlane.f32.xlu0 %v1426_v41  ;;  %v1427_v4 = vmul.f32 %v4020_v59, %v4020_v59 }
 0x423   : > { %v4030_v5 = vmul.f32 %v3789_v3, %v1420_v2  ;;  %1432 = vadd.xlane.f32.xlu1 %v1427_v4  ;;  %v1429_v9 = vmul.f32 %v4025_v60, %v4025_v60 }
 0x425   : > { %v1428_v7 = vmul.f32 %v4030_v5, %v4030_v5 }
 0x427   : > { %1434 = vadd.xlane.f32.xlu0 %v1428_v7  ;;  %1436 = vadd.xlane.f32.xlu1 %v1429_v9  ;;  %v3271_v9 = vld [vmem:[%s4014_s13] sm:$0xff]  }
 0x4ae   : > { %v1431_v21 = vpop.xlane.xlu0 %1430 }
 0x4af   : > { %v1438_v53 = vmul.f32 0.015625, %v1431_v21  ;;  %v3292_v21 = vld [vmem:[%s4014_s13 + $0xe8] sm:$0xff]  }
 0x4b0   : > { %v1433_v54 = vpop.xlane.xlu1 %1432 }
 0x4b1   : > { %v1442_v27 = vadd.f32 1e-05, %v1438_v53  ;;  %v1439_v57 = vmul.f32 0.015625, %v1433_v54  ;;  %v3293_v53 = vld [vmem:[%s4014_s13 + $0xa8] sm:$0xff]   ;;  %v3294_v54 = vld [vmem:[%s4014_s13 + $0x70] sm:$0xff]  }
 0x4b3   : > { %3328 = vrsqrt.f32 %v1442_v27  ;;  %v1443_v25 = vadd.f32 1e-05, %v1439_v57  ;;  %v3295_v27 = vld [vmem:[%s4014_s13 + $0x30] sm:$0xff]  }
 0x4b4   : > { %v1435_v26 = vpop.xlane.xlu0 %1434  ;;  %v1437_v49 = vpop.xlane.xlu1 %1436  ;;  %v3296_v57 = vld [vmem:[%s4014_s13 + $0xf0] sm:$0xff]  }
 0x4b5   : > { %3330 = vrsqrt.f32 %v1443_v25  ;;  %v1440_v62 = vmul.f32 0.015625, %v1435_v26  ;;  %v1441_v29 = vmul.f32 0.015625, %v1437_v49  ;;  %v3297_v25 = vld [vmem:[%s4014_s13 + $0xb0] sm:$0xff]   ;;  %v3298_v26 = vld [vmem:[%s4014_s13 + $0x78] sm:$0xff]  }
 0x4b6   : > { %v3299_v49 = vld [vmem:[%s4014_s13 + $0x38] sm:$0xff]  }
 0x4b7   : > { %v1444_v36 = vadd.f32 1e-05, %v1440_v62  ;;  %v1445_v28 = vadd.f32 1e-05, %v1441_v29  ;;  %v3300_v62 = vld [vmem:[%s4014_s13 + $0xf8] sm:$0xff]  }
 0x4b8   : > { %v3301_v29 = vld [vmem:[%s4014_s13 + $0xb8] sm:$0xff]  }
 0x4b9   : > { %3332 = vrsqrt.f32 %v1444_v36  ;;  %v4127_v36 = vld [vmem:[%s4014_s13 + $0x100] sm:$0xff]  }
 0x4ba   : > { %3334 = vrsqrt.f32 %v1445_v28  ;;  %v1541_v28 = vsub.s32 2, %v3844_v31 }
 0x4bd   : > { %v3329_v44 = vpop.eup %3328 }
 0x4be   : > { %v1450_v48 = vmul.f32 %v3329_v44, %v4017_v56  ;;  %v4135_v44 = vld [vmem:[%s1528_s26] sm:$0x1f] }
 0x4bf   : > { %v3331_v51 = vpop.eup %3330 }
 0x4c0   : > { %v1451_v34 = vmul.f32 %v3331_v51, %v4020_v59  ;;  %v1460_v55 = vmul.f32 %v2833_v45, %v1450_v48  ;;  %v3263_v59 = vld [vmem:[%s4004_s15 + $0x38] ss:$20 sps:$4 sm:$0xff]   ;;  %v1534_v48 = vrot.slane %v4135_v44, %v3850_v32  ;;  %v1542_v51 = vrot.slane %v4135_v44, %v1541_v28 }
 0x4c2   : > { %v1461_v58 = vmul.f32 %v2833_v45, %v1451_v34  ;;  %v4072_v0 = vadd.f32 %v2834_v52, %v1460_v55  ;;  %v1538_v34 = vrot.slane %v4135_v44, %v591_v47 }
 0x4c3   : > { %v3333_v61 = vpop.eup %3332 }
 0x4c4   : > { %v3335_v63 = vpop.eup %3334  ;;  %v4074_v1 = vadd.f32 %v2834_v52, %v1461_v58  ;;  %v1452_v56 = vmul.f32 %v3333_v61, %v4030_v5  ;;  %v3264_v5 = vld [vmem:[%s4004_s15 + $0x60] ss:$20 sps:$4 sm:$0xff]  }
 0x4c5   : > { %v1453_v41 = vmul.f32 %v3335_v63, %v4025_v60 }
 0x4c6   : > { %v1474_v2 = vpack.c.bf16 %v4074_v1, %v4072_v0  ;;  %v1462_v4 = vmul.f32 %v2833_v45, %v1452_v56 }
 0x4c7   : > { %v1463_v7 = vmul.f32 %v2833_v45, %v1453_v41  ;;  %v1545_v45 = vsub.s32 3, %v3844_v31 }
 0x4c8   : > { %1797 = vmatmul.mubr.bf16.vlgmr.msra.gmra.mrb[4].mxu1 %v1474_v2  ;;  %1850 = vmatmul.mubr.bf16.vlgmr.msra.gmra.mrb[8].mxu0 %v1474_v2  ;;  %v4086_v60 = vadd.f32 %v2834_v52, %v1462_v4 }
 0x4c9   : > { %3028 = vmatpush3.bf16.msra.mxu1 %v3262_v43  ;;  %1806 = vmatprep.mubr.bf16.mxu1 %v3559_v8  ;;  %v4088_v10 = vadd.f32 %v2834_v52, %v1463_v7  ;;  %v3290_v43 = vld [vmem:[%s4014_s13 + $0x68] sm:$0xff]   ;;  %v1546_v55 = vrot.slane %v4135_v44, %v1545_v45 }
 0x4ca   : > { %3029 = vmatprep.subr.bf16.mxu1 %v3263_v59  ;;  %1859 = vmatprep.mubr.bf16.mxu0 %v3559_v8  ;;  %v3266_v8 = vld [vmem:[%s4004_s15 + $0xb0] ss:$20 sps:$4 sm:$0xff]  }
 0x4cb   : > { %2950 = vmatpush3.bf16.msra.mxu0 %v3271_v9  ;;  %v1475_v13 = vpack.c.bf16 %v4088_v10, %v4086_v60 }
 0x4cc   : > { %2951 = vmatprep.subr.bf16.mxu0 %v3274_v6 }
 0x4cd   : > { %3030 = vmatpush3.bf16.msra.mxu1 %v3263_v59 }
 0x4ce   : > { %3031 = vmatprep.subr.bf16.mxu1 %v3264_v5 }
 0x4cf   : > { %2952 = vmatpush3.bf16.msra.mxu0 %v3275_v40 }
 0x4d0   : > { %1807 = vmatmul.mubr.bf16.gmra.mrb[8].mxu1 %v1475_v13  ;;  %1860 = vmatmul.mubr.bf16.gmra.mrb[12].mxu0 %v1475_v13 }
 0x4d1   : > { %3032 = vmatpush3.bf16.msra.mxu1 %v3264_v5  ;;  %3043 = vmatprep.mubr.bf16.mxu1 %v1474_v2 }
 0x4d2   : > { %3033 = vmatprep.subr.bf16.mxu1 %v3265_v15  ;;  %2953 = vmatprep.subr.bf16.mxu0 %v3278_v22 }
 0x4d3   : > { %2954 = vmatpush3.bf16.msra.mxu0 %v3279_v23 }
 0x4d4   : > { %2955 = vmatprep.subr.bf16.mxu0 %v3282_v33 }
 0x4d5   : > { %3034 = vmatpush3.bf16.msra.mxu1 %v3265_v15 }
 0x4d6   : > { %3035 = vmatprep.subr.bf16.mxu1 %v3266_v8 }
 0x4d7   : > { %2956 = vmatpush3.bf16.msra.mxu0 %v3283_v17 }
 0x4d8   : > { %2957 = vmatprep.subr.bf16.mxu0 %v3286_v38 }
 0x4d9   : > { %3036 = vmatpush3.bf16.msra.mxu1 %v3266_v8 }
 0x4da   : > { %3037 = vmatprep.subr.bf16.mxu1 %v3267_v16 }
 0x4db   : > { %2958 = vmatpush3.bf16.msra.mxu0 %v3287_v39 }
 0x4dc   : > { %2959 = vmatprep.subr.bf16.mxu0 %v3290_v43 }
 0x4dd   : > { %3038 = vmatpush3.bf16.msra.mxu1 %v3267_v16 }
 0x4de   : > { %3039 = vmatprep.subr.bf16.mxu1 %v3268_v18 }
 0x4df   : > { %2960 = vmatpush3.bf16.msra.mxu0 %v3291_v46 }
 0x4e0   : > { %2961 = vmatprep.subr.bf16.mxu0 %v3294_v54 }
 0x4e1   : > { %3040 = vmatpush3.bf16.msra.mxu1 %v3268_v18 }
 0x4e2   : > { %3041 = vmatprep.subr.bf16.mxu1 %v3269_v19 }
 0x4e3   : > { %2962 = vmatpush3.bf16.msra.mxu0 %v3295_v27 }
 0x4e4   : > { %2963 = vmatprep.subr.bf16.mxu0 %v3298_v26 }
 0x4e5   : > { %3042 = vmatpush3.bf16.msra.mxu1 %v3269_v19 }
 0x4e6   : > { %2977 = vmatprep.subr.bf16.mxu1 %v3272_v20 }
 0x4e7   : > { %2964 = vmatpush3.bf16.msra.mxu0 %v3299_v49 }
 0x4e8   : > { %3044 = vmatmul.mubr.bf16.vlgmr.msra.gmra.mrb[12].mxu1 %v1475_v13  ;;  %3047 = vmatprep.subr.bf16.mxu0 %v4127_v36 }
 0x4e9   : > { %2978 = vmatpush3.bf16.msra.mxu1 %v3273_v11 }
 0x4ea   : > { %2979 = vmatprep.subr.bf16.mxu1 %v3276_v12 }
 0x4ed   : > { %2980 = vmatpush3.bf16.msra.mxu1 %v3277_v14 }
 0x4ee   : > { %2981 = vmatprep.subr.bf16.mxu1 %v3280_v24 }
 0x4f1   : > { %2982 = vmatpush3.bf16.msra.mxu1 %v3281_v30 }
 0x4f2   : > { %2983 = vmatprep.subr.bf16.mxu1 %v3284_v35 }
 0x4f5   : > { %2984 = vmatpush3.bf16.msra.mxu1 %v3285_v37 }
 0x4f6   : > { %2985 = vmatprep.subr.bf16.mxu1 %v3288_v50 }
 0x4f9   : > { %2986 = vmatpush3.bf16.msra.mxu1 %v3289_v42 }
 0x4fa   : > { %2987 = vmatprep.subr.bf16.mxu1 %v3292_v21 }
 0x4fd   : > { %2988 = vmatpush3.bf16.msra.mxu1 %v3293_v53 }
 0x4fe   : > { %2989 = vmatprep.subr.bf16.mxu1 %v3296_v57 }
 0x501   : > { %2990 = vmatpush3.bf16.msra.mxu1 %v3297_v25 }
 0x502   : > { %2991 = vmatprep.subr.bf16.mxu1 %v3300_v62 }
 0x505   : > { %2992 = vmatpush3.bf16.msra.mxu1 %v3301_v29 }
 0x59b   : > { %v1798_v52 = vpop.f32.mrb[4].mxu1  ;;  %v1851_v58 = vpop.f32.mrb[8].mxu0 }
 0x59c   : > { %v1799_v61 = vadd.f32 %v1798_v52, %v1534_v48  ;;  %v1852_v63 = vadd.f32 %v1851_v58, %v1542_v51  ;;  %v1800_v56 = vpop.f32.mrb[5].mxu1  ;;  %v1853_v41 = vpop.f32.mrb[9].mxu0 }
 0x59d   : > { %v1801_v2 = vadd.f32 %v1800_v56, %v1538_v34  ;;  %v1854_v59 = vadd.f32 %v1853_v41, %v1546_v55  ;;  %v1802_v4 = vpop.f32.mrb[6].mxu1  ;;  %v1855_v7 = vpop.f32.mrb[10].mxu0 }
 0x59e   : > { %v1939_v9 = vmul.f32 0.70710677, %v1799_v61  ;;  %v1941_v32 = vmul.f32 0.70710677, %v1852_v63  ;;  %v1803_v40 = vadd.f32 %v1802_v4, %v1534_v48  ;;  %v4145_v13 = vadd.f32 %v1855_v7, %v1542_v51  ;;  %v1804_v47 = vpop.f32.mrb[7].mxu1  ;;  %v1857_v15 = vpop.f32.mrb[11].mxu0 }
 0x59f   : > { %v1940_v6 = vmul.f32 0.70710677, %v1801_v2  ;;  %v1942_v5 = vmul.f32 0.70710677, %v1854_v59  ;;  %v1805_v8 = vadd.f32 %v1804_v47, %v1538_v34  ;;  %v4147_v16 = vadd.f32 %v1857_v15, %v1546_v55 }
 0x5a0   : > { %3336 = verf.f32 %v1939_v9  ;;  %v1944_v18 = vmul.f32 0.70710677, %v1803_v40  ;;  %v1946_v19 = vmul.f32 0.70710677, %v4145_v13  ;;  %v1919_v62 = vmul.f32 0.5, %v1799_v61 }
 0x5a1   : > { %3338 = verf.f32 %v1941_v32  ;;  %v1945_v20 = vmul.f32 0.70710677, %v1805_v8  ;;  %v1947_v12 = vmul.f32 0.70710677, %v4147_v16  ;;  %v1921_v29 = vmul.f32 0.5, %v1852_v63 }
 0x5a2   : > { %3340 = verf.f32 %v1940_v6  ;;  %v1922_v56 = vmul.f32 0.5, %v1854_v59  ;;  %v1924_v41 = vmul.f32 0.5, %v1803_v40  ;;  %v1926_v32 = vmul.f32 0.5, %v4145_v13 }
 0x5a3   : > { %3342 = verf.f32 %v1942_v5  ;;  %v1808_v11 = vpop.f32.mrb[8].mxu1  ;;  %v1861_v22 = vpop.f32.mrb[12].mxu0 }
 0x5a4   : > { %3344 = verf.f32 %v1944_v18  ;;  %v4151_v14 = vadd.f32 %v1808_v11, %v1534_v48  ;;  %v1810_v23 = vpop.f32.mrb[9].mxu1  ;;  %v4153_v24 = vadd.f32 %v1861_v22, %v1542_v51  ;;  %v1863_v33 = vpop.f32.mrb[13].mxu0 }
 0x5a5   : > { %3346 = verf.f32 %v1946_v19  ;;  %v4155_v30 = vadd.f32 %v1810_v23, %v1538_v34  ;;  %v1812_v17 = vpop.f32.mrb[10].mxu1  ;;  %v4158_v37 = vadd.f32 %v1863_v33, %v1546_v55  ;;  %v1865_v38 = vpop.f32.mrb[14].mxu0  ;;  %v1927_v19 = vmul.f32 0.5, %v4147_v16 }
 0x5a6   : > { %3348 = verf.f32 %v1945_v20  ;;  %v1949_v35 = vmul.f32 0.70710677, %v4151_v14  ;;  %v1814_v39 = vpop.f32.mrb[11].mxu1  ;;  %v1951_v50 = vmul.f32 0.70710677, %v4153_v24  ;;  %v1867_v42 = vpop.f32.mrb[15].mxu0  ;;  %v4163_v21 = vadd.f32 %v1812_v17, %v1534_v48 }
 0x5a7   : > { %3350 = verf.f32 %v1947_v12  ;;  %v1950_v43 = vmul.f32 0.70710677, %v4155_v30  ;;  %v1952_v46 = vmul.f32 0.70710677, %v4158_v37  ;;  %v4165_v53 = vadd.f32 %v1865_v38, %v1542_v51 }
 0x5a8   : > { %3352 = verf.f32 %v1949_v35  ;;  %v4167_v54 = vadd.f32 %v1814_v39, %v1538_v34  ;;  %v1954_v25 = vmul.f32 0.70710677, %v4163_v21  ;;  %v4170_v26 = vadd.f32 %v1867_v42, %v1546_v55 }
 0x5a9   : > { %3354 = verf.f32 %v1951_v50  ;;  %v1956_v28 = vmul.f32 0.70710677, %v4165_v53  ;;  %v1920_v51 = vmul.f32 0.5, %v1801_v2  ;;  %v1925_v2 = vmul.f32 0.5, %v1805_v8 }
 0x5aa   : > { %v3337_v27 = vpop.eup %3336  ;;  %3356 = verf.f32 %v1950_v43  ;;  %v1955_v34 = vmul.f32 0.70710677, %v4167_v54  ;;  %v1957_v61 = vmul.f32 0.70710677, %v4170_v26  ;;  %v1549_v33 = vsub.s32 4, %v3844_v31 }
 0x5ab   : > { %v3339_v57 = vpop.eup %3338  ;;  %3358 = verf.f32 %v1952_v46  ;;  %v1979_v48 = vadd.f32 1.0, %v3337_v27  ;;  %v3303_v46 = vld [vmem:[%s4014_s13 + $0x108] sm:$0xff]   ;;  %v1929_v16 = vmul.f32 0.5, %v4151_v14  ;;  %v1931_v31 = vmul.f32 0.5, %v4153_v24 }
 0x5ac   : > { %v3341_v49 = vpop.eup %3340  ;;  %3360 = verf.f32 %v1954_v25  ;;  %v1981_v58 = vadd.f32 1.0, %v3339_v57  ;;  %v1550_v25 = vrot.slane %v4135_v44, %v1549_v33 }
 0x5ad   : > { %v3343_v45 = vpop.eup %3342  ;;  %3362 = verf.f32 %v1956_v28  ;;  %v1980_v55 = vadd.f32 1.0, %v3341_v49  ;;  %v1999_v47 = vmul.f32 %v1979_v48, %v1919_v62  ;;  %v1930_v62 = vmul.f32 0.5, %v4155_v30 }
 0x5ae   : > { %v3345_v52 = vpop.eup %3344  ;;  %3364 = verf.f32 %v1955_v34  ;;  %v1982_v9 = vadd.f32 1.0, %v3343_v45  ;;  %v2001_v59 = vmul.f32 %v1981_v58, %v1921_v29  ;;  %v1934_v29 = vmul.f32 0.5, %v4163_v21  ;;  %v3304_v21 = vld [vmem:[%s4014_s13 + $0x110] sm:$0xff]  }
 0x5af   : > { %v3347_v4 = vpop.eup %3346  ;;  %v1984_v7 = vadd.f32 1.0, %v3345_v52  ;;  %3366 = verf.f32 %v1957_v61  ;;  %v2000_v12 = vmul.f32 %v1980_v55, %v1920_v51  ;;  %v1936_v51 = vmul.f32 0.5, %v4165_v53 }
 0x5b0   : > { %v3349_v63 = vpop.eup %3348  ;;  %v1986_v6 = vadd.f32 1.0, %v3347_v4  ;;  %v2002_v17 = vmul.f32 %v1982_v9, %v1922_v56  ;;  %v1935_v34 = vmul.f32 0.5, %v4167_v54  ;;  %v1937_v55 = vmul.f32 0.5, %v4170_v26 }
 0x5b1   : > { %v3351_v5 = vpop.eup %3350  ;;  %v2004_v15 = vmul.f32 %v1984_v7, %v1924_v41  ;;  %v1985_v18 = vadd.f32 1.0, %v3349_v63  ;;  %v1932_v41 = vmul.f32 0.5, %v4158_v37 }
 0x5b2   : > { %v2006_v40 = vmul.f32 %v1986_v6, %v1926_v32  ;;  %v1987_v20 = vadd.f32 1.0, %v3351_v5  ;;  %v3353_v11 = vpop.eup %3352 }
 0x5b3   : > { %v2019_v22 = vpack.c.bf16 %v2004_v15, %v1999_v47  ;;  %v2005_v23 = vmul.f32 %v1985_v18, %v1925_v2  ;;  %v3355_v13 = vpop.eup %3354  ;;  %v1989_v42 = vadd.f32 1.0, %v3353_v11 }
 0x5b4   : > { %v2021_v8 = vpack.c.bf16 %v2006_v40, %v2001_v59  ;;  %v2007_v35 = vmul.f32 %v1987_v20, %v1927_v19  ;;  %v3357_v38 = vpop.eup %3356  ;;  %v1991_v57 = vadd.f32 1.0, %v3355_v13  ;;  %v3305_v19 = vld [vmem:[%s4014_s13 + $0x118] sm:$0xff]   ;;  %v3308_v13 = vld [vmem:[%s4014_s13 + $0x130] sm:$0xff]  }
 0x5b5   : > { %v2020_v39 = vpack.c.bf16 %v2005_v23, %v2000_v12  ;;  %v3359_v50 = vpop.eup %3358  ;;  %v1990_v48 = vadd.f32 1.0, %v3357_v38  ;;  %v2009_v44 = vmul.f32 %v1989_v42, %v1929_v16  ;;  %v3307_v23 = vld [vmem:[%s4014_s13 + $0x128] sm:$0xff]  }
 0x5b6   : > { %v2022_v43 = vpack.c.bf16 %v2007_v35, %v2002_v17  ;;  %v3361_v27 = vpop.eup %3360  ;;  %v1992_v24 = vadd.f32 1.0, %v3359_v50  ;;  %v2011_v56 = vmul.f32 %v1991_v57, %v1931_v31  ;;  %v3309_v57 = vld [vmem:[%s4014_s13 + $0x138] sm:$0xff]  }
 0x5b7   : > { %2391 = vmatprep.mubr.bf16.mxu0 %v2020_v39  ;;  %v3363_v49 = vpop.eup %3362  ;;  %v1994_v28 = vadd.f32 1.0, %v3361_v27  ;;  %v2010_v9 = vmul.f32 %v1990_v48, %v1930_v62 }
 0x5b8   : > { %2440 = vmatprep.mubr.bf16.mxu1 %v2022_v43  ;;  %2392 = vmatmul.mubr.bf16.vlgmr.msra.gmra.mrb[16].mxu0 %v2019_v22  ;;  %v3365_v45 = vpop.eup %3364  ;;  %v1996_v14 = vadd.f32 1.0, %v3363_v49  ;;  %v2012_v5 = vmul.f32 %v1992_v24, %v1932_v41  ;;  %v3306_v22 = vld [vmem:[%s4014_s13 + $0x120] sm:$0xff]  }
 0x5b9   : > { %2441 = vmatmul.mubr.bf16.vlgmr.msra.gmra.mrb[16].mxu1 %v2021_v8  ;;  %3048 = vmatpush3.bf16.msra.mxu0 %v4127_v36  ;;  %v2014_v52 = vmul.f32 %v1994_v28, %v1934_v29  ;;  %v1995_v30 = vadd.f32 1.0, %v3365_v45  ;;  %v3367_v58 = vpop.eup %3366 }
 0x5ba   : > { %3049 = vmatprep.subr.bf16.mxu0 %v3303_v46  ;;  %v2016_v4 = vmul.f32 %v1996_v14, %v1936_v51  ;;  %v1997_v61 = vadd.f32 1.0, %v3367_v58  ;;  %v2877_v51 = vld [vmem:[%s2111_s18] ss:$0 sm:$0xff] }
 0x5bb   : > { %v3045_v53 = vpop.f32.mrb[12].mxu1  ;;  %v2015_v7 = vmul.f32 %v1995_v30, %v1935_v34  ;;  %v2024_v36 = vpack.c.bf16 %v2014_v52, %v2009_v44 }
 0x5bc   : > { %v1913_v54 = vadd.f32 %v3045_v53, %v1550_v25  ;;  %v1904_v63 = vpop.f32.mrb[13].mxu1  ;;  %v2026_v2 = vpack.c.bf16 %v2016_v4, %v2011_v56  ;;  %v2017_v47 = vmul.f32 %v1997_v61, %v1937_v55 }
 0x5bd   : > { %3050 = vmatpush3.bf16.msra.mxu0 %v3303_v46  ;;  %v1905_v32 = vadd.f32 %v1904_v63, %v1550_v25  ;;  %v3046_v6 = vpop.f32.mrb[14].mxu1  ;;  %v2025_v59 = vpack.c.bf16 %v2015_v7, %v2010_v9 }
 0x5be   : > { %v1953_v15 = vmul.f32 0.70710677, %v1913_v54  ;;  %v1916_v18 = vadd.f32 %v3046_v6, %v1550_v25  ;;  %3051 = vmatprep.subr.bf16.mxu0 %v3304_v21  ;;  %v1907_v37 = vpop.f32.mrb[15].mxu1  ;;  %v2027_v11 = vpack.c.bf16 %v2017_v47, %v2012_v5  ;;  %v1933_v50 = vmul.f32 0.5, %v1913_v54 }
 0x5bf   : > { %v1943_v26 = vmul.f32 0.70710677, %v1905_v32  ;;  %v1908_v40 = vadd.f32 %v1907_v37, %v1550_v25  ;;  %2399 = vmatprep.mubr.bf16.mxu0 %v2025_v59  ;;  %v1923_v46 = vmul.f32 0.5, %v1905_v32 }
 0x5c0   : > { %3368 = verf.f32 %v1953_v15  ;;  %v1958_v20 = vmul.f32 0.70710677, %v1916_v18  ;;  %2448 = vmatprep.mubr.bf16.mxu1 %v2027_v11  ;;  %2400 = vmatmul.mubr.bf16.gmra.mrb[20].mxu0 %v2024_v36  ;;  %v1938_v42 = vmul.f32 0.5, %v1916_v18 }
 0x5c1   : > { %3370 = verf.f32 %v1943_v26  ;;  %v1948_v12 = vmul.f32 0.70710677, %v1908_v40  ;;  %3052 = vmatpush3.bf16.msra.mxu0 %v3304_v21  ;;  %2449 = vmatmul.mubr.bf16.gmra.mrb[20].mxu1 %v2026_v2  ;;  %v1928_v27 = vmul.f32 0.5, %v1908_v40 }
 0x5c2   : > { %3372 = verf.f32 %v1958_v20  ;;  %3053 = vmatprep.subr.bf16.mxu0 %v3305_v19 }
 0x5c3   : > { %3374 = verf.f32 %v1948_v12 }
 0x5c5   : > { %3054 = vmatpush3.bf16.msra.mxu0 %v3305_v19 }
 0x5c6   : > { %3055 = vmatprep.subr.bf16.mxu0 %v3306_v22 }
 0x5c9   : > { %3056 = vmatpush3.bf16.msra.mxu0 %v3306_v22 }
 0x5ca   : > { %v3369_v33 = vpop.eup %3368  ;;  %3057 = vmatprep.subr.bf16.mxu0 %v3307_v23 }
 0x5cb   : > { %v3371_v17 = vpop.eup %3370  ;;  %v1993_v8 = vadd.f32 1.0, %v3369_v33 }
 0x5cc   : > { %v3373_v35 = vpop.eup %3372  ;;  %v1983_v38 = vadd.f32 1.0, %v3371_v17 }
 0x5cd   : > { %v3375_v39 = vpop.eup %3374  ;;  %v1998_v43 = vadd.f32 1.0, %v3373_v35  ;;  %3058 = vmatpush3.bf16.msra.mxu0 %v3307_v23  ;;  %v2013_v25 = vmul.f32 %v1993_v8, %v1933_v50 }
 0x5ce   : > { %v1988_v16 = vadd.f32 1.0, %v3375_v39  ;;  %3059 = vmatprep.subr.bf16.mxu0 %v3308_v13  ;;  %v2003_v31 = vmul.f32 %v1983_v38, %v1923_v46 }
 0x5cf   : > { %v2018_v49 = vmul.f32 %v1998_v43, %v1938_v42 }
 0x5d0   : > { %v2008_v62 = vmul.f32 %v1988_v16, %v1928_v27 }
 0x5d1   : > { %v2028_v29 = vpack.c.bf16 %v2018_v49, %v2013_v25  ;;  %3060 = vmatpush3.bf16.msra.mxu0 %v3308_v13 }
 0x5d2   : > { %3061 = vmatprep.subr.bf16.mxu0 %v3309_v57  ;;  %v2023_v28 = vpack.c.bf16 %v2008_v62, %v2003_v31 }
 0x5d4   : > { %3063 = vmatprep.mubr.bf16.mxu0 %v2023_v28 }
 0x5d5   : > { %3062 = vmatpush3.bf16.msra.mxu0 %v3309_v57 }
 0x5d8   : > { %3064 = vmatmul.mubr.bf16.vlgmr.msra.gmra.mrb[24].mxu0 %v2028_v29 }
 0x68b   : > { %v2965_v45 = vpop.f32.mrb[16].mxu0 }
 0x68c   : > { %v2993_v48 = vpop.f32.mrb[16].mxu1  ;;  %v2966_v14 = vpop.f32.mrb[17].mxu0 }
 0x68d   : > { %v2967_v34 = vadd.f32 %v2966_v14, %v2965_v45  ;;  %v2994_v44 = vpop.f32.mrb[17].mxu1  ;;  %v2968_v24 = vpop.f32.mrb[18].mxu0 }
 0x68e   : > { %v2995_v52 = vadd.f32 %v2994_v44, %v2993_v48  ;;  %v2996_v30 = vpop.f32.mrb[18].mxu1  ;;  %v2969_v21 = vpop.f32.mrb[19].mxu0 }
 0x68f   : > { %v2394_v58 = vadd.f32 %v2967_v34, %v2877_v51  ;;  %v2970_v56 = vadd.f32 %v2969_v21, %v2968_v24  ;;  %v2997_v41 = vpop.f32.mrb[19].mxu1 }
 0x690   : > { %v2998_v4 = vadd.f32 %v2997_v41, %v2996_v30 }
 0x691   : > { %v2397_v55 = vadd.f32 %v2970_v56, %v2877_v51  ;;  %v2443_v53 = vadd.f32 %v2995_v52, %v2394_v58 }
 0x693   : > { %v2446_v7 = vadd.f32 %v2998_v4, %v2397_v55  ;;  %v2971_v61 = vpop.f32.mrb[20].mxu0 }
 0x694   : > { %v2999_v54 = vpop.f32.mrb[20].mxu1  ;;  %v2972_v63 = vpop.f32.mrb[21].mxu0 }
 0x695   : > { %v2973_v36 = vadd.f32 %v2972_v63, %v2971_v61  ;;  %v3000_v9 = vpop.f32.mrb[21].mxu1  ;;  %v2974_v32 = vpop.f32.mrb[22].mxu0 }
 0x696   : > { %v3001_v6 = vadd.f32 %v3000_v9, %v2999_v54  ;;  %v3002_v2 = vpop.f32.mrb[22].mxu1  ;;  %v2975_v5 = vpop.f32.mrb[23].mxu0  ;;  %v2919_v54 = vld [vmem:[%s2512_s24] ss:$0 sm:$0xff] }
 0x697   : > { %v2402_v47 = vadd.f32 %v2973_v36, %v2877_v51  ;;  %v2976_v15 = vadd.f32 %v2975_v5, %v2974_v32  ;;  %v3003_v18 = vpop.f32.mrb[23].mxu1 }
 0x698   : > { %v3004_v37 = vadd.f32 %v3003_v18, %v3002_v2 }
 0x699   : > { %v2405_v26 = vadd.f32 %v2976_v15, %v2877_v51  ;;  %v2451_v59 = vadd.f32 %v3001_v6, %v2402_v47 }
 0x69b   : > { %v2454_v40 = vadd.f32 %v3004_v37, %v2405_v26 }
 0x6ab   : > { %v3065_v19 = vpop.f32.mrb[24].mxu0 }
 0x6ac   : > { %v2500_v20 = vadd.f32 %v3065_v19, %v2451_v59  ;;  %v2491_v11 = vpop.f32.mrb[25].mxu0 }
 0x6ad   : > { %v2492_v12 = vadd.f32 %v2491_v11, %v2443_v53  ;;  %v3066_v22 = vpop.f32.mrb[26].mxu0  ;;  %v2918_v53 = vld [vmem:[%s2510_s7] ss:$0 sm:$0xff] }
 0x6ae   : > { %v2503_v23 = vadd.f32 %v3066_v22, %v2454_v40  ;;  %v2494_v33 = vpop.f32.mrb[27].mxu0  ;;  %v2508_v35 = vadd.f32 %v2500_v20, %v4086_v60 }
 0x6af   : > { %v2495_v13 = vadd.f32 %v2494_v33, %v2446_v7  ;;  %v2506_v17 = vadd.f32 %v2492_v12, %v4072_v0 }
 0x6b0   : > { %v2509_v38 = vadd.f32 %v2503_v23, %v4088_v10 }
 0x6b1   : > { %2514 = vadd.xlane.f32.xlu0 %v2506_v17  ;;  %v2507_v8 = vadd.f32 %v2495_v13, %v4074_v1 }
 0x6b3   : > { %2516 = vadd.xlane.f32.xlu1 %v2507_v8 }
 0x6b5   : > { %2518 = vadd.xlane.f32.xlu0 %v2508_v35 }
 0x6b7   : > { %2520 = vadd.xlane.f32.xlu1 %v2509_v38 }
 0x73e   : > { %v2515_v39 = vpop.xlane.xlu0 %2514 }
 0x73f   : > { %v2522_v50 = vmul.f32 0.015625, %v2515_v39 }
 0x740   : > { %v2517_v42 = vpop.xlane.xlu1 %2516 }
 0x741   : > { %v2526_v43 = vsub.f32 %v2506_v17, %v2522_v50  ;;  %v2523_v46 = vmul.f32 0.015625, %v2517_v42 }
 0x742   : > { %v2519_v27 = vpop.xlane.xlu0 %2518 }
 0x743   : > { %v2530_v16 = vmul.f32 %v3789_v3, %v2526_v43  ;;  %v2527_v57 = vsub.f32 %v2507_v8, %v2523_v46  ;;  %v2524_v0 = vmul.f32 0.015625, %v2519_v27 }
 0x744   : > { %v2521_v25 = vpop.xlane.xlu1 %2520 }
 0x745   : > { %v2531_v1 = vmul.f32 %v3789_v3, %v2527_v57  ;;  %v2528_v49 = vsub.f32 %v2508_v35, %v2524_v0  ;;  %v2525_v31 = vmul.f32 0.015625, %v2521_v25  ;;  %v2534_v60 = vmul.f32 %v2530_v16, %v2530_v16 }
 0x747   : > { %v2532_v62 = vmul.f32 %v3789_v3, %v2528_v49  ;;  %v2529_v10 = vsub.f32 %v2509_v38, %v2525_v31  ;;  %2538 = vadd.xlane.f32.xlu0 %v2534_v60  ;;  %v2535_v29 = vmul.f32 %v2531_v1, %v2531_v1 }
 0x749   : > { %v2533_v28 = vmul.f32 %v3789_v3, %v2529_v10  ;;  %2540 = vadd.xlane.f32.xlu1 %v2535_v29  ;;  %v2536_v45 = vmul.f32 %v2532_v62, %v2532_v62 }
 0x74b   : > { %2542 = vadd.xlane.f32.xlu0 %v2536_v45  ;;  %v2537_v48 = vmul.f32 %v2533_v28, %v2533_v28 }
 0x74d   : > { %2544 = vadd.xlane.f32.xlu1 %v2537_v48  ;;  %v2921_v48 = vld [vmem:[%s4352_s27] ss:$0 sm:$0xff] (!%p2920_p10) }
 0x7d4   : > { %v2539_v51 = vpop.xlane.xlu0 %2538 }
 0x7d5   : > { %v2546_v14 = vmul.f32 0.015625, %v2539_v51 }
 0x7d6   : > { %v2541_v34 = vpop.xlane.xlu1 %2540 }
 0x7d7   : > { %v2550_v44 = vadd.f32 1e-05, %v2546_v14  ;;  %v2547_v24 = vmul.f32 0.015625, %v2541_v34  ;;  %v2922_v14 = vld [vmem:[%s4353_s25] ss:$0 sm:$0xff] (!%p2920_p10) }
 0x7d8   : > { %v2543_v52 = vpop.xlane.xlu0 %2542 }
 0x7d9   : > { %3376 = vrsqrt.f32 %v2550_v44  ;;  %v2551_v30 = vadd.f32 1e-05, %v2547_v24  ;;  %v2548_v21 = vmul.f32 0.015625, %v2543_v52 }
 0x7da   : > { %v2545_v58 = vpop.xlane.xlu1 %2544 }
 0x7db   : > { %3378 = vrsqrt.f32 %v2551_v30  ;;  %v2552_v56 = vadd.f32 1e-05, %v2548_v21  ;;  %v2549_v41 = vmul.f32 0.015625, %v2545_v58 }
 0x7dd   : > { %3380 = vrsqrt.f32 %v2552_v56  ;;  %v2553_v4 = vadd.f32 1e-05, %v2549_v41 }
 0x7df   : > { %3382 = vrsqrt.f32 %v2553_v4 }
 0x7e3   : > { %v3377_v55 = vpop.eup %3376 }
 0x7e4   : > { %v2558_v7 = vmul.f32 %v3377_v55, %v2530_v16 }
 0x7e5   : > { %v3379_v61 = vpop.eup %3378 }
 0x7e6   : > { %v2568_v63 = vmul.f32 %v2918_v53, %v2558_v7  ;;  %v2559_v36 = vmul.f32 %v3379_v61, %v2531_v1 }
 0x7e7   : > { %v3381_v9 = vpop.eup %3380 }
 0x7e8   : > { %v2578_v32 = vadd.f32 %v2919_v54, %v2568_v63  ;;  %v2569_v6 = vmul.f32 %v2918_v53, %v2559_v36  ;;  %v2560_v2 = vmul.f32 %v3381_v9, %v2532_v62 }
 0x7e9   : > { %v3383_v5 = vpop.eup %3382 }
 0x7ea   : > { %2582 = vst [vmem:[%s3794_s28] sm:$0xff] %v2578_v32  ;;  %v2579_v47 = vadd.f32 %v2919_v54, %v2569_v6  ;;  %v2570_v15 = vmul.f32 %v2918_v53, %v2560_v2  ;;  %v2561_v18 = vmul.f32 %v3383_v5, %v2533_v28  ;;  %2589 = sbr.rel (%p2920_p10) target bundleno = 2348 (0x92c), region = 96  ;;  %2592 = vadd.xlane.f32.xlu0 (!%p2920_p10), %v2578_v32 }
 0x7ec   : > { %2583 = vst [vmem:[%s3794_s28 + $0x8] sm:$0xff] %v2579_v47  ;;  %v2580_v37 = vadd.f32 %v2919_v54, %v2570_v15  ;;  %v2571_v26 = vmul.f32 %v2918_v53, %v2561_v18 }
 0x7ee   : > { %2584 = vst [vmem:[%s3794_s28 + $0x10] sm:$0xff] %v2580_v37  ;;  %v2581_v59 = vadd.f32 %v2919_v54, %v2571_v26  ;;  %2596 = vadd.xlane.f32.xlu1 (!%p2920_p10), %v2580_v37  ;;  %2594 = vadd.xlane.f32.xlu0 (!%p2920_p10), %v2579_v47 }
 0x7f0   : > { %2585 = vst [vmem:[%s3794_s28 + $0x18] sm:$0xff] %v2581_v59 }
 0x7f2   : > { %2598 = vadd.xlane.f32.xlu1 %v2581_v59 }
 0x877   : > { %v2593_v40 = vpop.xlane.xlu0 %2592 }
 0x878   : > { %v2600_v20 = vmul.f32 0.015625, %v2593_v40 }
 0x87a   : > { %v2604_v12 = vsub.f32 %v2578_v32, %v2600_v20 }
 0x87b   : > { %v2597_v19 = vpop.xlane.xlu1 %2596  ;;  %v2595_v23 = vpop.xlane.xlu0 %2594 }
 0x87c   : > { %v2602_v11 = vmul.f32 0.015625, %v2597_v19  ;;  %v2608_v13 = vmul.f32 %v3789_v3, %v2604_v12  ;;  %v2601_v8 = vmul.f32 0.015625, %v2595_v23 }
 0x87e   : > { %v2606_v22 = vsub.f32 %v2580_v37, %v2602_v11  ;;  %v2605_v38 = vsub.f32 %v2579_v47, %v2601_v8  ;;  %v2612_v50 = vmul.f32 %v2608_v13, %v2608_v13 }
 0x87f   : > { %v2599_v33 = vpop.xlane.xlu1 %2598 }
 0x880   : > { %v2610_v17 = vmul.f32 %v3789_v3, %v2606_v22  ;;  %v2603_v35 = vmul.f32 0.015625, %v2599_v33  ;;  %v2609_v42 = vmul.f32 %v3789_v3, %v2605_v38  ;;  %2616 = vadd.xlane.f32.xlu0 %v2612_v50 }
 0x882   : > { %v2607_v39 = vsub.f32 %v2581_v59, %v2603_v35  ;;  %v2614_v46 = vmul.f32 %v2610_v17, %v2610_v17  ;;  %v2613_v27 = vmul.f32 %v2609_v42, %v2609_v42 }
 0x884   : > { %v2611_v43 = vmul.f32 %v3789_v3, %v2607_v39  ;;  %2620 = vadd.xlane.f32.xlu0 %v2614_v46  ;;  %2618 = vadd.xlane.f32.xlu1 %v2613_v27 }
 0x886   : > { %v2615_v16 = vmul.f32 %v2611_v43, %v2611_v43 }
 0x888   : > { %2622 = vadd.xlane.f32.xlu1 %v2615_v16 }
 0x90d   : > { %v2617_v57 = vpop.xlane.xlu0 %2616 }
 0x90e   : > { %v2624_v0 = vmul.f32 0.015625, %v2617_v57 }
 0x910   : > { %v2628_v25 = vadd.f32 1e-05, %v2624_v0 }
 0x911   : > { %v2619_v1 = vpop.xlane.xlu1 %2618  ;;  %v2621_v49 = vpop.xlane.xlu0 %2620 }
 0x912   : > { %3384 = vrsqrt.f32 %v2628_v25  ;;  %v2625_v31 = vmul.f32 0.015625, %v2619_v1  ;;  %v2626_v60 = vmul.f32 0.015625, %v2621_v49 }
 0x914   : > { %v2629_v62 = vadd.f32 1e-05, %v2625_v31  ;;  %v2630_v10 = vadd.f32 1e-05, %v2626_v60 }
 0x915   : > { %v2623_v29 = vpop.xlane.xlu1 %2622 }
 0x916   : > { %3386 = vrsqrt.f32 %v2629_v62  ;;  %v2627_v3 = vmul.f32 0.015625, %v2623_v29 }
 0x917   : > { %3388 = vrsqrt.f32 %v2630_v10 }
 0x918   : > { %v2631_v28 = vadd.f32 1e-05, %v2627_v3 }
 0x91a   : > { %3390 = vrsqrt.f32 %v2631_v28 }
 0x91c   : > { %v3385_v45 = vpop.eup %3384 }
 0x91d   : > { %v2636_v51 = vmul.f32 %v3385_v45, %v2608_v13 }
 0x91f   : > { %v2646_v34 = vmul.f32 %v2921_v48, %v2636_v51 }
 0x920   : > { %v3387_v44 = vpop.eup %3386 }
 0x921   : > { %v3389_v24 = vpop.eup %3388  ;;  %v2656_v52 = vadd.f32 %v2922_v14, %v2646_v34  ;;  %v2637_v30 = vmul.f32 %v3387_v44, %v2609_v42 }
 0x922   : > { %v2638_v21 = vmul.f32 %v3389_v24, %v2610_v17 }
 0x923   : > { %2660 = vst [vmem:[%s3794_s28] sm:$0xff] %v2656_v52  ;;  %v2647_v58 = vmul.f32 %v2921_v48, %v2637_v30 }
 0x924   : > { %v3391_v56 = vpop.eup %3390  ;;  %v2648_v41 = vmul.f32 %v2921_v48, %v2638_v21 }
 0x925   : > { %v2657_v4 = vadd.f32 %v2922_v14, %v2647_v58  ;;  %v2639_v55 = vmul.f32 %v3391_v56, %v2611_v43 }
 0x926   : > { %v2658_v53 = vadd.f32 %v2922_v14, %v2648_v41 }
 0x927   : > { %2661 = vst [vmem:[%s3794_s28 + $0x8] sm:$0xff] %v2657_v4  ;;  %v2649_v7 = vmul.f32 %v2921_v48, %v2639_v55 }
 0x928   : > { %2662 = vst [vmem:[%s3794_s28 + $0x10] sm:$0xff] %v2658_v53 }
 0x929   : > { %v2659_v61 = vadd.f32 %v2922_v14, %v2649_v7 }
 0x92b   : > { %2663 = vst [vmem:[%s3794_s28 + $0x18] sm:$0xff] %v2659_v61 }
 0x92c PF: > { %s4354_s30 = sld [smem:[#allocation17_spill]]  ;;  %s2932_s18 = sshll.u32 %s3538_s22, 9 }
 0x92d   : > { %s4355_s20 = sld [smem:[#allocation25_spill]]  ;;  %s2678_s17 = sshll.u32 %s3794_s28, 4  ;;  %s4241_s17 = int_to_ptr.vmem [resolvable:$true] %s2678_s17 }
 0x92e   : > { %s4245_s23 = scalar_lea.sflag [#allocation4], %s528_s14  ;;  %s3448_s24 = scalar_lea.vmem %s4241_s17, 512 }
 0x92f   : > { %p3449_p13 = scmp.ne.s32.totalorder %s4241_s17, %s3448_s24  ;;  %s3564_s22 = smov [#allocation7]  }
 0x930   : > { %s3452_s21 = sshll.u32 %s3564_s22, 4  ;;  %s3453_s21 = int_to_ptr.vmem [resolvable:$false] %s3452_s21 }
 0x931   : > { %s3454_s29 = scalar_lea.vmem %s3453_s21, 1024  ;;  %p3455_p6 = scmp.lt.s32.totalorder %s4241_s17, %s3453_s21 }
 0x932   : > { %p4357_p1 = scmp.ne.s32.totalorder %s4354_s30, 0  ;;  %p3456_p7 = scmp.lt.s32.totalorder %s3454_s29, %s3448_s24 }
 0x933   : > { %s4356_s7 = smov %s4355_s20  ;;  %s4238_s8 = scalar_lea.hbm %s4355_s20, %s2932_s18 }
 0x934   : > { %p3450_p4 = pnand %p3449_p13, %p4357_p1  ;;  %p3457_p8 = por %p3456_p7, %p3455_p6 }
 0x936   : > { %p3451_p5 = pneg %p3450_p4 }
 0x938   : > { %p3458_p11 = pnand %p3457_p8, %p3451_p5 }
 0x93a   : > { %3461 = shalt.err (!%p3458_p11)
}
 0x93b   : > { %s3462_s14 = scalar_lea.hbm %s4238_s8, 512  ;;  %s3466_s16 = scalar_lea.hbm %s4356_s7, 1024 }
 0x93c   : > { %p3463_p12 = scmp.ne.s32.totalorder %s4238_s8, %s3462_s14  ;;  %p3467_p0 = scmp.lt.u32.totalorder %s4238_s8, %s4356_s7 }
 0x93d   : > { %p3468_p2 = scmp.lt.u32.totalorder %s3466_s16, %s3462_s14  ;;  %p3470_p13 = scmp.lt.u32.totalorder %s3462_s14, %s4238_s8 }
 0x93e   : > { %p3464_p3 = pnand %p3463_p12, %p4357_p1 }
 0x93f   : > { %p3469_p10 = por %p3468_p2, %p3467_p0 }
 0x940   : > { %p3465_p9 = pneg %p3464_p3 }
 0x941   : > { %p3471_p4 = por %p3470_p13, %p3469_p10 }
 0x943   : > { %p3472_p5 = pnand %p3471_p4, %p3465_p9 }
 0x945   : > { %3475 = shalt.err (!%p3472_p5)
}
 0x946   : > { %s3565_s18 = smov 128   ;;  %s3566_s15 = smov 8  }
 0x947   : > { %3075 = dma.vmem_to_hbm [thread:$0]  (%p4357_p1), %s4241_s17, 512, %s4238_s8, %s4245_s23, %s3565_s18, %s3565_s18, %s3566_s15  }
 0x948 PF: > { %s4358_s13 = sld [smem:[#allocation15_spill]]  ;;  %s4359_s20 = sld [smem:[#allocation11_spill]] }
 0x949   : > { %s4360_s24 = sld [smem:[#allocation19_spill]] }
 0x94e   : > { %p3092_p6 = scmp.ge.s32.totalorder %s4358_s13, 2  ;;  %s2693_s22 = sand.u32 1, %s4359_s20  }
 0x94f   : > { %p4361_p7 = scmp.ne.s32.totalorder %s4360_s24, 0  ;;  %s2694_s21 = scalar_lea.sflag [#allocation4], %s2693_s22 }
 0x951   : > { %p3085_p8 = pnand %p3092_p6, %p4361_p7 }
 0x953   : > { %3517 = dma.done.wait (!%p3085_p8), %s2694_s21, 512  }
 0x954   : > { %3519 = vsyncadd (!%p3085_p8), %s2694_s21, 4294966784  ;;  %s30_s25 = sadd.s32 1, %s4358_s13   ;;  %s4362_s29 = sld [smem:[#allocation12_spill]] }
 0x955   : > { %p27_p11 = scmp.ge.s32.totalorder %s30_s25, 6   ;;  %s4363_s20 = sld [smem:[#allocation20_spill]] }
 0x956   : > { %s4364_s21 = sld [smem:[#allocation13_spill]]  ;;  %s4365_s22 = sld [smem:[#allocation14_spill]] }
 0x957   : > { %s4366_s23 = sld [smem:[#allocation16_spill]]  ;;  %s4367_s24 = sld [smem:[#allocation18_spill]] }
 0x958   : > { %s4368_s18 = smov %s3526_s19  ;;  %29 = sbr.rel (!%p27_p11) target bundleno = 13 (0xd), region = 144 }
 0x95a   : > { %s4369_s19 = smov %s4362_s29 }
 0x95f   :  { %2699 = vsyncpa [#allocation3], 1 }
 0x960   :  { %2701 = vsyncpa [#allocation3 + $0x1], 1 }
 0x961   :  { %2702 = vsyncpa [#allocation6], 1 }
 0x962   :  { %2703 = vsyncpa [#allocation4], 1 }
 0x963   :  { %2705 = vsyncpa [#allocation4 + $0x1], 1 }

</bundles_post_ra>
